<compile_context>
chip_gen: v7x
topology: tpu7x:2x2x1
jax: 0.10.0
libtpu: 0.0.40
codegen_flags: <defaults>
</compile_context>

<pallas_src>
import functools

import jax
import jax.numpy as jnp
from jax.experimental import pallas as pl
from jax.experimental.pallas import tpu as pltpu

EPS = 1e-5
MXU_DTYPE = jnp.bfloat16            # MXU-native operand dtype (f32 accumulation)
VMEM_LIMIT = 48 * 1024 * 1024       # fits v7x's 64 MiB VMEM with headroom


def _round_up(x, m):
    return -(-x // m) * m


# ----------------------------------------------------------------------------
# Kernels
# ----------------------------------------------------------------------------
def _conv1_kernel(*refs, taps, Mc, Ws, Ho, Wo, has_sc):
    """Implicit-GEMM 3x3 conv (+ optional fused 1x1 shortcut conv) with fused
    per-channel sum / sum-of-squares accumulation.  One image per grid step."""
    if has_sc:
        (x_ref, w_ref, ws_ref,
         y_ref, ys_ref, s1_ref, q1_ref, ss_ref, qs_ref) = refs
    else:
        (x_ref, w_ref, y_ref, s1_ref, q1_ref) = refs
        ws_ref = ys_ref = ss_ref = qs_ref = None

    @pl.when(pl.program_id(0) == 0)
    def _init():
        s1_ref[...] = jnp.zeros_like(s1_ref)
        q1_ref[...] = jnp.zeros_like(q1_ref)
        if has_sc:
            ss_ref[...] = jnp.zeros_like(ss_ref)
            qs_ref[...] = jnp.zeros_like(qs_ref)

    acc = None
    a_center = None
    for t, (p, off) in enumerate(taps):
        a = x_ref[p, 0, pl.ds(off, Mc), :].astype(MXU_DTYPE)   # (Mc, Cin)
        if t == 4:                                             # tap (kh, kw) == (1, 1)
            a_center = a
        c = jnp.dot(a, w_ref[t], preferred_element_type=jnp.float32)
        acc = c if acc is None else acc + c                    # (Mc, Cout) f32

    # Scatter the valid (Ho x Wo) sub-grid of the padded compute grid densely
    # into the output, then accumulate BN statistics from the stored values.
    for ho in range(Ho):
        y_ref[0, pl.ds(ho * Wo, Wo), :] = acc[ho * Ws:ho * Ws + Wo, :]
    y = y_ref[0]
    s1_ref[...] += jnp.sum(y, axis=0, keepdims=True)
    q1_ref[...] += jnp.sum(y * y, axis=0, keepdims=True)

    if has_sc:
        ysc = jnp.dot(a_center, ws_ref[...], preferred_element_type=jnp.float32)
        for ho in range(Ho):
            ys_ref[0, pl.ds(ho * Wo, Wo), :] = ysc[ho * Ws:ho * Ws + Wo, :]
        ys = ys_ref[0]
        ss_ref[...] += jnp.sum(ys, axis=0, keepdims=True)
        qs_ref[...] += jnp.sum(ys * ys, axis=0, keepdims=True)


def _conv2_kernel(y1_ref, w_ref, sc_ref, b_ref, y2_ref, s2_ref, q2_ref,
                  pad_ref, *, Ho, Wo, Wp, Mc):
    """BN1 affine + ReLU fused into the 3x3 stride-1 conv (implicit GEMM),
    with fused per-channel sum / sum-of-squares accumulation."""
    @pl.when(pl.program_id(0) == 0)
    def _init():
        s2_ref[...] = jnp.zeros_like(s2_ref)
        q2_ref[...] = jnp.zeros_like(q2_ref)

    # Build the zero-padded, BN+ReLU-transformed operand in VMEM scratch.
    pad_ref[...] = jnp.zeros_like(pad_ref)
    sc = sc_ref[...]
    b = b_ref[...]
    for ho in range(Ho):
        rows = y1_ref[0, pl.ds(ho * Wo, Wo), :]                # (Wo, C) f32
        pad_ref[pl.ds((ho + 1) * Wp + 1, Wo), :] = jnp.maximum(rows * sc + b, 0.0)

    acc = None
    for t in range(9):
        kh, kw = divmod(t, 3)
        a = pad_ref[pl.ds(kh * Wp + kw, Mc), :].astype(MXU_DTYPE)
        c = jnp.dot(a, w_ref[t], preferred_element_type=jnp.float32)
        acc = c if acc is None else acc + c

    for ho in range(Ho):
        y2_ref[0, pl.ds(ho * Wo, Wo), :] = acc[ho * Wp:ho * Wp + Wo, :]
    y = y2_ref[0]
    s2_ref[...] += jnp.sum(y, axis=0, keepdims=True)
    q2_ref[...] += jnp.sum(y * y, axis=0, keepdims=True)


def _bn_add_relu_kernel(y_ref, r_ref, sy_ref, by_ref, sr_ref, br_ref, o_ref):
    """relu(BN2(y2) + BN_s(shortcut)) fused elementwise epilogue."""
    o_ref[...] = jnp.maximum(
        y_ref[...] * sy_ref[...] + by_ref[...]
        + r_ref[...] * sr_ref[...] + br_ref[...], 0.0)


# ----------------------------------------------------------------------------
# Wrappers
# ----------------------------------------------------------------------------
def _prep_conv1_input(x_nhwc, stride):
    """Pad (3x3, pad=1), parity-decompose for the stride, flatten spatially.

    Returns xs of shape (stride**2, N, R, Cin): sub-image p holds the pixels of
    spatial parity p, row-major flattened, zero-padded so every tap window is a
    contiguous in-bounds row slice.  Total size ~= input size (no 9x im2col)."""
    N, H, W, C = x_nhwc.shape
    xp = jnp.pad(x_nhwc, ((0, 0), (1, 1), (1, 1), (0, 0)))
    Hp = _round_up(H + 2, stride)
    Wp = _round_up(W + 2, stride)
    xp = jnp.pad(xp, ((0, 0), (0, Hp - (H + 2)), (0, Wp - (W + 2)), (0, 0)))
    Hs, Ws = Hp // stride, Wp // stride
    subs = [xp[:, ph::stride, pw::stride, :]
            for ph in range(stride) for pw in range(stride)]
    xs = jnp.stack(subs, axis=0).reshape(stride * stride, N, Hs * Ws, C)
    dmax = 2 // stride                         # max per-sub-image tap offset
    Mg = Hs * Ws
    Mc = _round_up(Mg, 8)                      # MXU-friendly compute rows
    R = Mc + _round_up(dmax * Ws + dmax, 8)
    xs = jnp.pad(xs, ((0, 0), (0, 0), (0, R - Mg), (0, 0)))
    return xs, Ws, Mc, R


def _w3x3_taps(w):
    # (Cout, Cin, 3, 3) -> (9, Cin, Cout), tap-major (kh, kw) order, bf16.
    return jnp.transpose(w, (2, 3, 1, 0)).reshape(
        9, w.shape[1], w.shape[0]).astype(MXU_DTYPE)


def conv1_shortcut_stats(xs, w_taps, ws_mat, *, N, Cin, Cout, R, Ws, Mc,
                         Ho, Wo, stride):
    P = stride * stride
    Mo = Ho * Wo
    taps = [((kh % stride) * stride + (kw % stride),
             (kh // stride) * Ws + (kw // stride))
            for kh in range(3) for kw in range(3)]
    has_sc = ws_mat is not None

    kernel = functools.partial(_conv1_kernel, taps=taps, Mc=Mc, Ws=Ws,
                               Ho=Ho, Wo=Wo, has_sc=has_sc)

    in_specs = [pl.BlockSpec((P, 1, R, Cin), lambda n: (0, n, 0, 0)),
                pl.BlockSpec((9, Cin, Cout), lambda n: (0, 0, 0))]
    inputs = [xs, w_taps]
    out_shape = [jax.ShapeDtypeStruct((N, Mo, Cout), jnp.float32)]
    out_specs = [pl.BlockSpec((1, Mo, Cout), lambda n: (n, 0, 0))]
    if has_sc:
        in_specs.append(pl.BlockSpec((Cin, Cout), lambda n: (0, 0)))
        inputs.append(ws_mat)
        out_shape.append(jax.ShapeDtypeStruct((N, Mo, Cout), jnp.float32))
        out_specs.append(pl.BlockSpec((1, Mo, Cout), lambda n: (n, 0, 0)))
    n_stats = 4 if has_sc else 2
    out_shape += [jax.ShapeDtypeStruct((1, Cout), jnp.float32)] * n_stats
    out_specs += [pl.BlockSpec((1, Cout), lambda n: (0, 0))] * n_stats

    return pl.pallas_call(
        kernel,
        out_shape=tuple(out_shape),
        grid=(N,),
        in_specs=in_specs,
        out_specs=tuple(out_specs),
        compiler_params=pltpu.CompilerParams(
            dimension_semantics=("arbitrary",),   # stats accumulate across batch
            vmem_limit_bytes=VMEM_LIMIT),
    )(*inputs)


def conv2_fused_stats(y1, w_taps, scale1, bias1, *, Ho, Wo):
    N, Mo, C = y1.shape
    Wp = Wo + 2
    Mc = _round_up(Ho * Wp, 8)
    R = _round_up(Mc + 2 * Wp + 2, 8)
    kernel = functools.partial(_conv2_kernel, Ho=Ho, Wo=Wo, Wp=Wp, Mc=Mc)
    return pl.pallas_call(
        kernel,
        out_shape=(jax.ShapeDtypeStruct((N, Mo, C), jnp.float32),
                   jax.ShapeDtypeStruct((1, C), jnp.float32),
                   jax.ShapeDtypeStruct((1, C), jnp.float32)),
        grid=(N,),
        in_specs=[pl.BlockSpec((1, Mo, C), lambda n: (n, 0, 0)),
                  pl.BlockSpec((9, C, C), lambda n: (0, 0, 0)),
                  pl.BlockSpec((1, C), lambda n: (0, 0)),
                  pl.BlockSpec((1, C), lambda n: (0, 0))],
        out_specs=(pl.BlockSpec((1, Mo, C), lambda n: (n, 0, 0)),
                   pl.BlockSpec((1, C), lambda n: (0, 0)),
                   pl.BlockSpec((1, C), lambda n: (0, 0))),
        scratch_shapes=[pltpu.VMEM((R, C), jnp.float32)],
        compiler_params=pltpu.CompilerParams(
            dimension_semantics=("arbitrary",),
            vmem_limit_bytes=VMEM_LIMIT),
    )(y1, w_taps, scale1, bias1)


def bn_add_relu(y2, short, scale_y, bias_y, scale_r, bias_r):
    """relu(scale_y*y2 + bias_y + scale_r*short + bias_r) on lane-dense tiles."""
    N, Mo, C = y2.shape
    M = N * Mo
    a = y2.reshape(M, C)
    r = short.reshape(M, C)
    if C < 128 and 128 % C == 0 and (M * C) % 128 == 0:
        rep = 128 // C                        # fold rows into lanes -> dense vst
        a = a.reshape(M * C // 128, 128)
        r = r.reshape(M * C // 128, 128)
        scale_y = jnp.tile(scale_y, (1, rep))
        bias_y = jnp.tile(bias_y, (1, rep))
        scale_r = jnp.tile(scale_r, (1, rep))
        bias_r = jnp.tile(bias_r, (1, rep))
    Rr, L = a.shape
    TR = Rr
    for t in (1024, 512, 256, 128, 64, 32, 16, 8):   # big mem-bound row tiles
        if Rr % t == 0:
            TR = t
            break
    out = pl.pallas_call(
        _bn_add_relu_kernel,
        out_shape=jax.ShapeDtypeStruct((Rr, L), jnp.float32),
        grid=(Rr // TR,),
        in_specs=[pl.BlockSpec((TR, L), lambda i: (i, 0)),
                  pl.BlockSpec((TR, L), lambda i: (i, 0)),
                  pl.BlockSpec((1, L), lambda i: (0, 0)),
                  pl.BlockSpec((1, L), lambda i: (0, 0)),
                  pl.BlockSpec((1, L), lambda i: (0, 0)),
                  pl.BlockSpec((1, L), lambda i: (0, 0))],
        out_specs=pl.BlockSpec((TR, L), lambda i: (i, 0)),
        compiler_params=pltpu.CompilerParams(
            dimension_semantics=("parallel",)),
    )(a, r, scale_y, bias_y, scale_r, bias_r)
    return out.reshape(N, Mo, C)


def _finalize_bn(s, q, count, gamma, beta):
    mean = s / count
    var = jnp.maximum(q / count - mean * mean, 0.0)   # clamp: cancellation guard
    inv = jax.lax.rsqrt(var + EPS)
    scale = gamma.reshape(1, -1).astype(jnp.float32) * inv
    bias = beta.reshape(1, -1).astype(jnp.float32) - mean * scale
    return scale, bias


def basic_block_forward(x_nchw, params, stride):
    assert stride in (1, 2)
    x = jnp.transpose(x_nchw, (0, 2, 3, 1)).astype(jnp.float32)   # NHWC
    N, H, W, Cin = x.shape
    Cout = params["w1"].shape[0]
    has_sc = (stride != 1) or (Cin != Cout)

    Ho = (H - 1) // stride + 1
    Wo = (W - 1) // stride + 1
    Mo = Ho * Wo

    # --- conv1 (3x3, stride s) + optional 1x1 shortcut + fused stats --------
    xs, Ws, Mc, R = _prep_conv1_input(x, stride)
    w1 = _w3x3_taps(params["w1"])
    ws = (jnp.transpose(params["ws"].reshape(Cout, Cin)).astype(MXU_DTYPE)
          if has_sc else None)
    outs = conv1_shortcut_stats(xs, w1, ws, N=N, Cin=Cin, Cout=Cout, R=R,
                                Ws=Ws, Mc=Mc, Ho=Ho, Wo=Wo, stride=stride)
    if has_sc:
        y1, ysc, s1, q1, ss, qs = outs
    else:
        y1, s1, q1 = outs

    count = N * Mo
    sc1, b1 = _finalize_bn(s1, q1, count, params["g1"], params["b1"])

    # --- conv2 (3x3, stride 1) with BN1-affine+ReLU fused on its input ------
    w2 = _w3x3_taps(params["w2"])
    y2, s2, q2 = conv2_fused_stats(y1, w2, sc1, b1, Ho=Ho, Wo=Wo)
    sc2, b2 = _finalize_bn(s2, q2, count, params["g2"], params["b2"])

    # --- shortcut BN affine folded into the final add+ReLU epilogue ---------
    if has_sc:
        scs, bs = _finalize_bn(ss, qs, count, params["gs"], params["bs"])
        short = ysc
    else:
        scs = jnp.ones((1, Cout), jnp.float32)
        bs = jnp.zeros((1, Cout), jnp.float32)
        short = x.reshape(N, H * W, Cin)

    out = bn_add_relu(y2, short, sc2, b2, scs, bs)
    out = out.reshape(N, Ho, Wo, Cout)
    return jnp.transpose(out, (0, 3, 1, 2))              # back to NCHW


# ----------------------------------------------------------------------------
# Pure-JAX reference (validation)
# ----------------------------------------------------------------------------
def ref_forward(x, params, stride):
    def conv(z, w, s, pad):
        return jax.lax.conv_general_dilated(
            z, w, (s, s), pad, dimension_numbers=("NCHW", "OIHW", "NCHW"))

    def bn(z, g, b):
        mean = jnp.mean(z, axis=(0, 2, 3), keepdims=True)
        var = jnp.mean((z - mean) ** 2, axis=(0, 2, 3), keepdims=True)
        return ((z - mean) / jnp.sqrt(var + EPS)
                * g.reshape(1, -1, 1, 1) + b.reshape(1, -1, 1, 1))

    Cin, Cout = x.shape[1], params["w1"].shape[0]
    y = conv(x, params["w1"], stride, ((1, 1), (1, 1)))
    y = jax.nn.relu(bn(y, params["g1"], params["b1"]))
    y = conv(y, params["w2"], 1, ((1, 1), (1, 1)))
    y = bn(y, params["g2"], params["b2"])
    if stride != 1 or Cin != Cout:
        s = conv(x, params["ws"], stride, ((0, 0), (0, 0)))
        s = bn(s, params["gs"], params["bs"])
    else:
        s = x
    return jax.nn.relu(y + s)


# ----------------------------------------------------------------------------
if __name__ == "__main__":
    def make_params(key, cin, cout, with_sc):
        ks = jax.random.split(key, 9)
        p = {
            "w1": 0.1 * jax.random.normal(ks[0], (cout, cin, 3, 3), jnp.float32),
            "g1": 1.0 + 0.1 * jax.random.normal(ks[1], (cout,), jnp.float32),
            "b1": 0.1 * jax.random.normal(ks[2], (cout,), jnp.float32),
            "w2": 0.1 * jax.random.normal(ks[3], (cout, cout, 3, 3), jnp.float32),
            "g2": 1.0 + 0.1 * jax.random.normal(ks[4], (cout,), jnp.float32),
            "b2": 0.1 * jax.random.normal(ks[5], (cout,), jnp.float32),
        }
        if with_sc:
            p["ws"] = 0.1 * jax.random.normal(ks[6], (cout, cin, 1, 1), jnp.float32)
            p["gs"] = 1.0 + 0.1 * jax.random.normal(ks[7], (cout,), jnp.float32)
            p["bs"] = 0.1 * jax.random.normal(ks[8], (cout,), jnp.float32)
        return p

    # Case 1: projection shortcut (stride 2, channel expansion).
    N, Cin, H, W, Cout, stride = 2, 4, 16, 16, 8, 2
    params = make_params(jax.random.PRNGKey(0), Cin, Cout, True)
    x = jax.random.normal(jax.random.PRNGKey(1), (N, Cin, H, W), jnp.float32)
    out = jax.block_until_ready(basic_block_forward(x, params, stride))
    ref = jax.block_until_ready(ref_forward(x, params, stride))
    assert out.shape == ref.shape, (out.shape, ref.shape)
    # Tolerance sized for bf16 MXU operands (stats / BN affine stay in f32).
    assert jnp.allclose(out, ref, atol=5e-2, rtol=5e-2), float(
        jnp.max(jnp.abs(out - ref)))

    # Case 2: identity shortcut (stride 1, same channels).
    params2 = make_params(jax.random.PRNGKey(2), 8, 8, False)
    x2 = jax.random.normal(jax.random.PRNGKey(3), (2, 8, 16, 16), jnp.float32)
    out2 = jax.block_until_ready(basic_block_forward(x2, params2, 1))
    ref2 = jax.block_until_ready(ref_forward(x2, params2, 1))
    assert out2.shape == ref2.shape, (out2.shape, ref2.shape)
    assert jnp.allclose(out2, ref2, atol=5e-2, rtol=5e-2), float(
        jnp.max(jnp.abs(out2 - ref2)))

    print("KERNEL_OK")
</pallas_src>

<mosaic_0001>
module attributes {stable_mosaic.version = 11 : i64} {
  func.func @_conv1_kernel(%arg0: i32, %arg1: memref<4x1x104x4xf32, #tpu.memory_space<vmem>>, %arg2: memref<9x4x8xbf16, #tpu.memory_space<vmem>>, %arg3: memref<4x8xbf16, #tpu.memory_space<vmem>>, %arg4: memref<1x64x8xf32, #tpu.memory_space<vmem>>, %arg5: memref<1x64x8xf32, #tpu.memory_space<vmem>>, %arg6: memref<1x8xf32, #tpu.memory_space<vmem>>, %arg7: memref<1x8xf32, #tpu.memory_space<vmem>>, %arg8: memref<1x8xf32, #tpu.memory_space<vmem>>, %arg9: memref<1x8xf32, #tpu.memory_space<vmem>>) attributes {dimension_semantics = [#tpu.dimension_semantics<arbitrary>], iteration_bounds = array<i64: 2>, scalar_prefetch = 0 : i64, scratch_operands = 0 : i64, tpu.core_type = #tpu.core_type<tc>, window_params = [{transform_indices = @transform_0, window_bounds = array<i64: 4, 1, 104, 4>}, {pipeline_mode = #tpu.pipeline_mode<synchronous>, transform_indices = @transform_1, window_bounds = array<i64: 9, 4, 8>}, {pipeline_mode = #tpu.pipeline_mode<synchronous>, transform_indices = @transform_2, window_bounds = array<i64: 4, 8>}, {transform_indices = @transform_3, window_bounds = array<i64: 1, 64, 8>}, {transform_indices = @transform_4, window_bounds = array<i64: 1, 64, 8>}, {pipeline_mode = #tpu.pipeline_mode<synchronous>, transform_indices = @transform_5, window_bounds = array<i64: 1, 8>}, {pipeline_mode = #tpu.pipeline_mode<synchronous>, transform_indices = @transform_6, window_bounds = array<i64: 1, 8>}, {pipeline_mode = #tpu.pipeline_mode<synchronous>, transform_indices = @transform_7, window_bounds = array<i64: 1, 8>}, {pipeline_mode = #tpu.pipeline_mode<synchronous>, transform_indices = @transform_8, window_bounds = array<i64: 1, 8>}]} {
    %c0_i32 = arith.constant 0 : i32
    %0 = arith.cmpi eq, %arg0, %c0_i32 : i32
    %1 = arith.extui %0 : i1 to i32
    %c0_i32_0 = arith.constant 0 : i32
    %2 = arith.cmpi ne, %1, %c0_i32_0 : i32
    scf.if %2 {
      %cst_132 = arith.constant 0.000000e+00 : f32
      %157 = vector.broadcast %cst_132 : f32 to vector<1x8xf32>
      %c0_133 = arith.constant 0 : index
      %c0_134 = arith.constant 0 : index
      %158 = vector.load %arg6[%c0_133, %c0_134] : memref<1x8xf32, #tpu.memory_space<vmem>>, vector<1x8xf32>
      tpu.vector_store %arg6[%c0_133, %c0_134], %157 {strides = array<i32>} : memref<1x8xf32, #tpu.memory_space<vmem>>, vector<1x8xf32>,
      %cst_135 = arith.constant 0.000000e+00 : f32
      %159 = vector.broadcast %cst_135 : f32 to vector<1x8xf32>
      %c0_136 = arith.constant 0 : index
      %c0_137 = arith.constant 0 : index
      %160 = vector.load %arg7[%c0_136, %c0_137] : memref<1x8xf32, #tpu.memory_space<vmem>>, vector<1x8xf32>
      tpu.vector_store %arg7[%c0_136, %c0_137], %159 {strides = array<i32>} : memref<1x8xf32, #tpu.memory_space<vmem>>, vector<1x8xf32>,
      %cst_138 = arith.constant 0.000000e+00 : f32
      %161 = vector.broadcast %cst_138 : f32 to vector<1x8xf32>
      %c0_139 = arith.constant 0 : index
      %c0_140 = arith.constant 0 : index
      %162 = vector.load %arg8[%c0_139, %c0_140] : memref<1x8xf32, #tpu.memory_space<vmem>>, vector<1x8xf32>
      tpu.vector_store %arg8[%c0_139, %c0_140], %161 {strides = array<i32>} : memref<1x8xf32, #tpu.memory_space<vmem>>, vector<1x8xf32>,
      %cst_141 = arith.constant 0.000000e+00 : f32
      %163 = vector.broadcast %cst_141 : f32 to vector<1x8xf32>
      %c0_142 = arith.constant 0 : index
      %c0_143 = arith.constant 0 : index
      %164 = vector.load %arg9[%c0_142, %c0_143] : memref<1x8xf32, #tpu.memory_space<vmem>>, vector<1x8xf32>
      tpu.vector_store %arg9[%c0_142, %c0_143], %163 {strides = array<i32>} : memref<1x8xf32, #tpu.memory_space<vmem>>, vector<1x8xf32>,
    } else {
    }
    %c0 = arith.constant 0 : index
    %c0_1 = arith.constant 0 : index
    %c0_2 = arith.constant 0 : index
    %c0_3 = arith.constant 0 : index
    %3 = vector.load %arg1[%c0, %c0_1, %c0_2, %c0_3] : memref<4x1x104x4xf32, #tpu.memory_space<vmem>>, vector<1x1x88x4xf32>
    %4 = vector.shape_cast %3 : vector<1x1x88x4xf32> to vector<88x4xf32>
    %5 = arith.truncf %4 : vector<88x4xf32> to vector<88x4xbf16>
    %c0_4 = arith.constant 0 : index
    %c0_5 = arith.constant 0 : index
    %c0_6 = arith.constant 0 : index
    %6 = vector.load %arg2[%c0_4, %c0_5, %c0_6] : memref<9x4x8xbf16, #tpu.memory_space<vmem>>, vector<1x4x8xbf16>
    %7 = vector.shape_cast %6 : vector<1x4x8xbf16> to vector<4x8xbf16>
    %cst = arith.constant dense<0.000000e+00> : vector<88x8xf32>
    %8 = tpu.matmul %5, %7, %cst {dimension_numbers = #tpu.dot_dimension_numbers<[1], [0], [0], [1], [0, 0, 1, 1], [], []>} : vector<88x4xbf16>, vector<4x8xbf16>, vector<88x8xf32> -> vector<88x8xf32>
    %c1 = arith.constant 1 : index
    %c0_7 = arith.constant 0 : index
    %c0_8 = arith.constant 0 : index
    %c0_9 = arith.constant 0 : index
    %9 = vector.load %arg1[%c1, %c0_7, %c0_8, %c0_9] : memref<4x1x104x4xf32, #tpu.memory_space<vmem>>, vector<1x1x88x4xf32>
    %10 = vector.shape_cast %9 : vector<1x1x88x4xf32> to vector<88x4xf32>
    %11 = arith.truncf %10 : vector<88x4xf32> to vector<88x4xbf16>
    %c1_10 = arith.constant 1 : index
    %c0_11 = arith.constant 0 : index
    %c0_12 = arith.constant 0 : index
    %12 = vector.load %arg2[%c1_10, %c0_11, %c0_12] : memref<9x4x8xbf16, #tpu.memory_space<vmem>>, vector<1x4x8xbf16>
    %13 = vector.shape_cast %12 : vector<1x4x8xbf16> to vector<4x8xbf16>
    %cst_13 = arith.constant dense<0.000000e+00> : vector<88x8xf32>
    %14 = tpu.matmul %11, %13, %cst_13 {dimension_numbers = #tpu.dot_dimension_numbers<[1], [0], [0], [1], [0, 0, 1, 1], [], []>} : vector<88x4xbf16>, vector<4x8xbf16>, vector<88x8xf32> -> vector<88x8xf32>
    %15 = arith.addf %8, %14 : vector<88x8xf32>
    %c0_14 = arith.constant 0 : index
    %c0_15 = arith.constant 0 : index
    %c1_16 = arith.constant 1 : index
    %c0_17 = arith.constant 0 : index
    %16 = vector.load %arg1[%c0_14, %c0_15, %c1_16, %c0_17] : memref<4x1x104x4xf32, #tpu.memory_space<vmem>>, vector<1x1x88x4xf32>
    %17 = vector.shape_cast %16 : vector<1x1x88x4xf32> to vector<88x4xf32>
    %18 = arith.truncf %17 : vector<88x4xf32> to vector<88x4xbf16>
    %c2 = arith.constant 2 : index
    %c0_18 = arith.constant 0 : index
    %c0_19 = arith.constant 0 : index
    %19 = vector.load %arg2[%c2, %c0_18, %c0_19] : memref<9x4x8xbf16, #tpu.memory_space<vmem>>, vector<1x4x8xbf16>
    %20 = vector.shape_cast %19 : vector<1x4x8xbf16> to vector<4x8xbf16>
    %cst_20 = arith.constant dense<0.000000e+00> : vector<88x8xf32>
    %21 = tpu.matmul %18, %20, %cst_20 {dimension_numbers = #tpu.dot_dimension_numbers<[1], [0], [0], [1], [0, 0, 1, 1], [], []>} : vector<88x4xbf16>, vector<4x8xbf16>, vector<88x8xf32> -> vector<88x8xf32>
    %22 = arith.addf %15, %21 : vector<88x8xf32>
    %c2_21 = arith.constant 2 : index
    %c0_22 = arith.constant 0 : index
    %c0_23 = arith.constant 0 : index
    %c0_24 = arith.constant 0 : index
    %23 = vector.load %arg1[%c2_21, %c0_22, %c0_23, %c0_24] : memref<4x1x104x4xf32, #tpu.memory_space<vmem>>, vector<1x1x88x4xf32>
    %24 = vector.shape_cast %23 : vector<1x1x88x4xf32> to vector<88x4xf32>
    %25 = arith.truncf %24 : vector<88x4xf32> to vector<88x4xbf16>
    %c3 = arith.constant 3 : index
    %c0_25 = arith.constant 0 : index
    %c0_26 = arith.constant 0 : index
    %26 = vector.load %arg2[%c3, %c0_25, %c0_26] : memref<9x4x8xbf16, #tpu.memory_space<vmem>>, vector<1x4x8xbf16>
    %27 = vector.shape_cast %26 : vector<1x4x8xbf16> to vector<4x8xbf16>
    %cst_27 = arith.constant dense<0.000000e+00> : vector<88x8xf32>
    %28 = tpu.matmul %25, %27, %cst_27 {dimension_numbers = #tpu.dot_dimension_numbers<[1], [0], [0], [1], [0, 0, 1, 1], [], []>} : vector<88x4xbf16>, vector<4x8xbf16>, vector<88x8xf32> -> vector<88x8xf32>
    %29 = arith.addf %22, %28 : vector<88x8xf32>
    %c3_28 = arith.constant 3 : index
    %c0_29 = arith.constant 0 : index
    %c0_30 = arith.constant 0 : index
    %c0_31 = arith.constant 0 : index
    %30 = vector.load %arg1[%c3_28, %c0_29, %c0_30, %c0_31] : memref<4x1x104x4xf32, #tpu.memory_space<vmem>>, vector<1x1x88x4xf32>
    %31 = vector.shape_cast %30 : vector<1x1x88x4xf32> to vector<88x4xf32>
    %32 = arith.truncf %31 : vector<88x4xf32> to vector<88x4xbf16>
    %c4 = arith.constant 4 : index
    %c0_32 = arith.constant 0 : index
    %c0_33 = arith.constant 0 : index
    %33 = vector.load %arg2[%c4, %c0_32, %c0_33] : memref<9x4x8xbf16, #tpu.memory_space<vmem>>, vector<1x4x8xbf16>
    %34 = vector.shape_cast %33 : vector<1x4x8xbf16> to vector<4x8xbf16>
    %cst_34 = arith.constant dense<0.000000e+00> : vector<88x8xf32>
    %35 = tpu.matmul %32, %34, %cst_34 {dimension_numbers = #tpu.dot_dimension_numbers<[1], [0], [0], [1], [0, 0, 1, 1], [], []>} : vector<88x4xbf16>, vector<4x8xbf16>, vector<88x8xf32> -> vector<88x8xf32>
    %36 = arith.addf %29, %35 : vector<88x8xf32>
    %c2_35 = arith.constant 2 : index
    %c0_36 = arith.constant 0 : index
    %c1_37 = arith.constant 1 : index
    %c0_38 = arith.constant 0 : index
    %37 = vector.load %arg1[%c2_35, %c0_36, %c1_37, %c0_38] : memref<4x1x104x4xf32, #tpu.memory_space<vmem>>, vector<1x1x88x4xf32>
    %38 = vector.shape_cast %37 : vector<1x1x88x4xf32> to vector<88x4xf32>
    %39 = arith.truncf %38 : vector<88x4xf32> to vector<88x4xbf16>
    %c5 = arith.constant 5 : index
    %c0_39 = arith.constant 0 : index
    %c0_40 = arith.constant 0 : index
    %40 = vector.load %arg2[%c5, %c0_39, %c0_40] : memref<9x4x8xbf16, #tpu.memory_space<vmem>>, vector<1x4x8xbf16>
    %41 = vector.shape_cast %40 : vector<1x4x8xbf16> to vector<4x8xbf16>
    %cst_41 = arith.constant dense<0.000000e+00> : vector<88x8xf32>
    %42 = tpu.matmul %39, %41, %cst_41 {dimension_numbers = #tpu.dot_dimension_numbers<[1], [0], [0], [1], [0, 0, 1, 1], [], []>} : vector<88x4xbf16>, vector<4x8xbf16>, vector<88x8xf32> -> vector<88x8xf32>
    %43 = arith.addf %36, %42 : vector<88x8xf32>
    %c0_42 = arith.constant 0 : index
    %c0_43 = arith.constant 0 : index
    %c9 = arith.constant 9 : index
    %c0_44 = arith.constant 0 : index
    %44 = vector.load %arg1[%c0_42, %c0_43, %c9, %c0_44] : memref<4x1x104x4xf32, #tpu.memory_space<vmem>>, vector<1x1x88x4xf32>
    %45 = vector.shape_cast %44 : vector<1x1x88x4xf32> to vector<88x4xf32>
    %46 = arith.truncf %45 : vector<88x4xf32> to vector<88x4xbf16>
    %c6 = arith.constant 6 : index
    %c0_45 = arith.constant 0 : index
    %c0_46 = arith.constant 0 : index
    %47 = vector.load %arg2[%c6, %c0_45, %c0_46] : memref<9x4x8xbf16, #tpu.memory_space<vmem>>, vector<1x4x8xbf16>
    %48 = vector.shape_cast %47 : vector<1x4x8xbf16> to vector<4x8xbf16>
    %cst_47 = arith.constant dense<0.000000e+00> : vector<88x8xf32>
    %49 = tpu.matmul %46, %48, %cst_47 {dimension_numbers = #tpu.dot_dimension_numbers<[1], [0], [0], [1], [0, 0, 1, 1], [], []>} : vector<88x4xbf16>, vector<4x8xbf16>, vector<88x8xf32> -> vector<88x8xf32>
    %50 = arith.addf %43, %49 : vector<88x8xf32>
    %c1_48 = arith.constant 1 : index
    %c0_49 = arith.constant 0 : index
    %c9_50 = arith.constant 9 : index
    %c0_51 = arith.constant 0 : index
    %51 = vector.load %arg1[%c1_48, %c0_49, %c9_50, %c0_51] : memref<4x1x104x4xf32, #tpu.memory_space<vmem>>, vector<1x1x88x4xf32>
    %52 = vector.shape_cast %51 : vector<1x1x88x4xf32> to vector<88x4xf32>
    %53 = arith.truncf %52 : vector<88x4xf32> to vector<88x4xbf16>
    %c7 = arith.constant 7 : index
    %c0_52 = arith.constant 0 : index
    %c0_53 = arith.constant 0 : index
    %54 = vector.load %arg2[%c7, %c0_52, %c0_53] : memref<9x4x8xbf16, #tpu.memory_space<vmem>>, vector<1x4x8xbf16>
    %55 = vector.shape_cast %54 : vector<1x4x8xbf16> to vector<4x8xbf16>
    %cst_54 = arith.constant dense<0.000000e+00> : vector<88x8xf32>
    %56 = tpu.matmul %53, %55, %cst_54 {dimension_numbers = #tpu.dot_dimension_numbers<[1], [0], [0], [1], [0, 0, 1, 1], [], []>} : vector<88x4xbf16>, vector<4x8xbf16>, vector<88x8xf32> -> vector<88x8xf32>
    %57 = arith.addf %50, %56 : vector<88x8xf32>
    %c0_55 = arith.constant 0 : index
    %c0_56 = arith.constant 0 : index
    %c10 = arith.constant 10 : index
    %c0_57 = arith.constant 0 : index
    %58 = vector.load %arg1[%c0_55, %c0_56, %c10, %c0_57] : memref<4x1x104x4xf32, #tpu.memory_space<vmem>>, vector<1x1x88x4xf32>
    %59 = vector.shape_cast %58 : vector<1x1x88x4xf32> to vector<88x4xf32>
    %60 = arith.truncf %59 : vector<88x4xf32> to vector<88x4xbf16>
    %c8 = arith.constant 8 : index
    %c0_58 = arith.constant 0 : index
    %c0_59 = arith.constant 0 : index
    %61 = vector.load %arg2[%c8, %c0_58, %c0_59] : memref<9x4x8xbf16, #tpu.memory_space<vmem>>, vector<1x4x8xbf16>
    %62 = vector.shape_cast %61 : vector<1x4x8xbf16> to vector<4x8xbf16>
    %cst_60 = arith.constant dense<0.000000e+00> : vector<88x8xf32>
    %63 = tpu.matmul %60, %62, %cst_60 {dimension_numbers = #tpu.dot_dimension_numbers<[1], [0], [0], [1], [0, 0, 1, 1], [], []>} : vector<88x4xbf16>, vector<4x8xbf16>, vector<88x8xf32> -> vector<88x8xf32>
    %64 = arith.addf %57, %63 : vector<88x8xf32>
    %65 = vector.extract_strided_slice %64 {offsets = [0, 0], sizes = [8, 8], strides = [1, 1]} : vector<88x8xf32> to vector<8x8xf32>
    %c0_61 = arith.constant 0 : index
    %c0_62 = arith.constant 0 : index
    %c0_63 = arith.constant 0 : index
    %66 = vector.load %arg4[%c0_61, %c0_62, %c0_63] : memref<1x64x8xf32, #tpu.memory_space<vmem>>, vector<1x8x8xf32>
    %67 = vector.shape_cast %66 : vector<1x8x8xf32> to vector<8x8xf32>
    %68 = vector.shape_cast %65 : vector<8x8xf32> to vector<1x8x8xf32>
    tpu.vector_store %arg4[%c0_61, %c0_62, %c0_63], %68 {strides = array<i32>} : memref<1x64x8xf32, #tpu.memory_space<vmem>>, vector<1x8x8xf32>,
    %69 = vector.extract_strided_slice %64 {offsets = [9, 0], sizes = [8, 8], strides = [1, 1]} : vector<88x8xf32> to vector<8x8xf32>
    %c0_64 = arith.constant 0 : index
    %c8_65 = arith.constant 8 : index
    %c0_66 = arith.constant 0 : index
    %70 = vector.load %arg4[%c0_64, %c8_65, %c0_66] : memref<1x64x8xf32, #tpu.memory_space<vmem>>, vector<1x8x8xf32>
    %71 = vector.shape_cast %70 : vector<1x8x8xf32> to vector<8x8xf32>
    %72 = vector.shape_cast %69 : vector<8x8xf32> to vector<1x8x8xf32>
    tpu.vector_store %arg4[%c0_64, %c8_65, %c0_66], %72 {strides = array<i32>} : memref<1x64x8xf32, #tpu.memory_space<vmem>>, vector<1x8x8xf32>,
    %73 = vector.extract_strided_slice %64 {offsets = [18, 0], sizes = [8, 8], strides = [1, 1]} : vector<88x8xf32> to vector<8x8xf32>
    %c0_67 = arith.constant 0 : index
    %c16 = arith.constant 16 : index
    %c0_68 = arith.constant 0 : index
    %74 = vector.load %arg4[%c0_67, %c16, %c0_68] : memref<1x64x8xf32, #tpu.memory_space<vmem>>, vector<1x8x8xf32>
    %75 = vector.shape_cast %74 : vector<1x8x8xf32> to vector<8x8xf32>
    %76 = vector.shape_cast %73 : vector<8x8xf32> to vector<1x8x8xf32>
    tpu.vector_store %arg4[%c0_67, %c16, %c0_68], %76 {strides = array<i32>} : memref<1x64x8xf32, #tpu.memory_space<vmem>>, vector<1x8x8xf32>,
    %77 = vector.extract_strided_slice %64 {offsets = [27, 0], sizes = [8, 8], strides = [1, 1]} : vector<88x8xf32> to vector<8x8xf32>
    %c0_69 = arith.constant 0 : index
    %c24 = arith.constant 24 : index
    %c0_70 = arith.constant 0 : index
    %78 = vector.load %arg4[%c0_69, %c24, %c0_70] : memref<1x64x8xf32, #tpu.memory_space<vmem>>, vector<1x8x8xf32>
    %79 = vector.shape_cast %78 : vector<1x8x8xf32> to vector<8x8xf32>
    %80 = vector.shape_cast %77 : vector<8x8xf32> to vector<1x8x8xf32>
    tpu.vector_store %arg4[%c0_69, %c24, %c0_70], %80 {strides = array<i32>} : memref<1x64x8xf32, #tpu.memory_space<vmem>>, vector<1x8x8xf32>,
    %81 = vector.extract_strided_slice %64 {offsets = [36, 0], sizes = [8, 8], strides = [1, 1]} : vector<88x8xf32> to vector<8x8xf32>
    %c0_71 = arith.constant 0 : index
    %c32 = arith.constant 32 : index
    %c0_72 = arith.constant 0 : index
    %82 = vector.load %arg4[%c0_71, %c32, %c0_72] : memref<1x64x8xf32, #tpu.memory_space<vmem>>, vector<1x8x8xf32>
    %83 = vector.shape_cast %82 : vector<1x8x8xf32> to vector<8x8xf32>
    %84 = vector.shape_cast %81 : vector<8x8xf32> to vector<1x8x8xf32>
    tpu.vector_store %arg4[%c0_71, %c32, %c0_72], %84 {strides = array<i32>} : memref<1x64x8xf32, #tpu.memory_space<vmem>>, vector<1x8x8xf32>,
    %85 = vector.extract_strided_slice %64 {offsets = [45, 0], sizes = [8, 8], strides = [1, 1]} : vector<88x8xf32> to vector<8x8xf32>
    %c0_73 = arith.constant 0 : index
    %c40 = arith.constant 40 : index
    %c0_74 = arith.constant 0 : index
    %86 = vector.load %arg4[%c0_73, %c40, %c0_74] : memref<1x64x8xf32, #tpu.memory_space<vmem>>, vector<1x8x8xf32>
    %87 = vector.shape_cast %86 : vector<1x8x8xf32> to vector<8x8xf32>
    %88 = vector.shape_cast %85 : vector<8x8xf32> to vector<1x8x8xf32>
    tpu.vector_store %arg4[%c0_73, %c40, %c0_74], %88 {strides = array<i32>} : memref<1x64x8xf32, #tpu.memory_space<vmem>>, vector<1x8x8xf32>,
    %89 = vector.extract_strided_slice %64 {offsets = [54, 0], sizes = [8, 8], strides = [1, 1]} : vector<88x8xf32> to vector<8x8xf32>
    %c0_75 = arith.constant 0 : index
    %c48 = arith.constant 48 : index
    %c0_76 = arith.constant 0 : index
    %90 = vector.load %arg4[%c0_75, %c48, %c0_76] : memref<1x64x8xf32, #tpu.memory_space<vmem>>, vector<1x8x8xf32>
    %91 = vector.shape_cast %90 : vector<1x8x8xf32> to vector<8x8xf32>
    %92 = vector.shape_cast %89 : vector<8x8xf32> to vector<1x8x8xf32>
    tpu.vector_store %arg4[%c0_75, %c48, %c0_76], %92 {strides = array<i32>} : memref<1x64x8xf32, #tpu.memory_space<vmem>>, vector<1x8x8xf32>,
    %93 = vector.extract_strided_slice %64 {offsets = [63, 0], sizes = [8, 8], strides = [1, 1]} : vector<88x8xf32> to vector<8x8xf32>
    %c0_77 = arith.constant 0 : index
    %c56 = arith.constant 56 : index
    %c0_78 = arith.constant 0 : index
    %94 = vector.load %arg4[%c0_77, %c56, %c0_78] : memref<1x64x8xf32, #tpu.memory_space<vmem>>, vector<1x8x8xf32>
    %95 = vector.shape_cast %94 : vector<1x8x8xf32> to vector<8x8xf32>
    %96 = vector.shape_cast %93 : vector<8x8xf32> to vector<1x8x8xf32>
    tpu.vector_store %arg4[%c0_77, %c56, %c0_78], %96 {strides = array<i32>} : memref<1x64x8xf32, #tpu.memory_space<vmem>>, vector<1x8x8xf32>,
    %c0_79 = arith.constant 0 : index
    %c0_80 = arith.constant 0 : index
    %c0_81 = arith.constant 0 : index
    %97 = vector.load %arg4[%c0_79, %c0_80, %c0_81] : memref<1x64x8xf32, #tpu.memory_space<vmem>>, vector<1x64x8xf32>
    %98 = vector.shape_cast %97 : vector<1x64x8xf32> to vector<64x8xf32>
    %c0_82 = arith.constant 0 : index
    %c0_83 = arith.constant 0 : index
    %99 = vector.load %arg6[%c0_82, %c0_83] : memref<1x8xf32, #tpu.memory_space<vmem>>, vector<1x8xf32>
    %cst_84 = arith.constant dense<0.000000e+00> : vector<8xf32>
    %100 = vector.multi_reduction <add>, %98, %cst_84 [0] : vector<64x8xf32> to vector<8xf32>
    %101 = vector.shape_cast %100 : vector<8xf32> to vector<1x8xf32>
    %102 = arith.addf %99, %101 : vector<1x8xf32>
    %c0_85 = arith.constant 0 : index
    %c0_86 = arith.constant 0 : index
    %103 = vector.load %arg6[%c0_85, %c0_86] : memref<1x8xf32, #tpu.memory_space<vmem>>, vector<1x8xf32>
    tpu.vector_store %arg6[%c0_85, %c0_86], %102 {strides = array<i32>} : memref<1x8xf32, #tpu.memory_space<vmem>>, vector<1x8xf32>,
    %c0_87 = arith.constant 0 : index
    %c0_88 = arith.constant 0 : index
    %104 = vector.load %arg7[%c0_87, %c0_88] : memref<1x8xf32, #tpu.memory_space<vmem>>, vector<1x8xf32>
    %105 = arith.mulf %98, %98 : vector<64x8xf32>
    %cst_89 = arith.constant dense<0.000000e+00> : vector<8xf32>
    %106 = vector.multi_reduction <add>, %105, %cst_89 [0] : vector<64x8xf32> to vector<8xf32>
    %107 = vector.shape_cast %106 : vector<8xf32> to vector<1x8xf32>
    %108 = arith.addf %104, %107 : vector<1x8xf32>
    %c0_90 = arith.constant 0 : index
    %c0_91 = arith.constant 0 : index
    %109 = vector.load %arg7[%c0_90, %c0_91] : memref<1x8xf32, #tpu.memory_space<vmem>>, vector<1x8xf32>
    tpu.vector_store %arg7[%c0_90, %c0_91], %108 {strides = array<i32>} : memref<1x8xf32, #tpu.memory_space<vmem>>, vector<1x8xf32>,
    %c0_92 = arith.constant 0 : index
    %c0_93 = arith.constant 0 : index
    %110 = vector.load %arg3[%c0_92, %c0_93] : memref<4x8xbf16, #tpu.memory_space<vmem>>, vector<4x8xbf16>
    %cst_94 = arith.constant dense<0.000000e+00> : vector<88x8xf32>
    %111 = tpu.matmul %32, %110, %cst_94 {dimension_numbers = #tpu.dot_dimension_numbers<[1], [0], [0], [1], [0, 0, 1, 1], [], []>} : vector<88x4xbf16>, vector<4x8xbf16>, vector<88x8xf32> -> vector<88x8xf32>
    %112 = vector.extract_strided_slice %111 {offsets = [0, 0], sizes = [8, 8], strides = [1, 1]} : vector<88x8xf32> to vector<8x8xf32>
    %c0_95 = arith.constant 0 : index
    %c0_96 = arith.constant 0 : index
    %c0_97 = arith.constant 0 : index
    %113 = vector.load %arg5[%c0_95, %c0_96, %c0_97] : memref<1x64x8xf32, #tpu.memory_space<vmem>>, vector<1x8x8xf32>
    %114 = vector.shape_cast %113 : vector<1x8x8xf32> to vector<8x8xf32>
    %115 = vector.shape_cast %112 : vector<8x8xf32> to vector<1x8x8xf32>
    tpu.vector_store %arg5[%c0_95, %c0_96, %c0_97], %115 {strides = array<i32>} : memref<1x64x8xf32, #tpu.memory_space<vmem>>, vector<1x8x8xf32>,
    %116 = vector.extract_strided_slice %111 {offsets = [9, 0], sizes = [8, 8], strides = [1, 1]} : vector<88x8xf32> to vector<8x8xf32>
    %c0_98 = arith.constant 0 : index
    %c8_99 = arith.constant 8 : index
    %c0_100 = arith.constant 0 : index
    %117 = vector.load %arg5[%c0_98, %c8_99, %c0_100] : memref<1x64x8xf32, #tpu.memory_space<vmem>>, vector<1x8x8xf32>
    %118 = vector.shape_cast %117 : vector<1x8x8xf32> to vector<8x8xf32>
    %119 = vector.shape_cast %116 : vector<8x8xf32> to vector<1x8x8xf32>
    tpu.vector_store %arg5[%c0_98, %c8_99, %c0_100], %119 {strides = array<i32>} : memref<1x64x8xf32, #tpu.memory_space<vmem>>, vector<1x8x8xf32>,
    %120 = vector.extract_strided_slice %111 {offsets = [18, 0], sizes = [8, 8], strides = [1, 1]} : vector<88x8xf32> to vector<8x8xf32>
    %c0_101 = arith.constant 0 : index
    %c16_102 = arith.constant 16 : index
    %c0_103 = arith.constant 0 : index
    %121 = vector.load %arg5[%c0_101, %c16_102, %c0_103] : memref<1x64x8xf32, #tpu.memory_space<vmem>>, vector<1x8x8xf32>
    %122 = vector.shape_cast %121 : vector<1x8x8xf32> to vector<8x8xf32>
    %123 = vector.shape_cast %120 : vector<8x8xf32> to vector<1x8x8xf32>
    tpu.vector_store %arg5[%c0_101, %c16_102, %c0_103], %123 {strides = array<i32>} : memref<1x64x8xf32, #tpu.memory_space<vmem>>, vector<1x8x8xf32>,
    %124 = vector.extract_strided_slice %111 {offsets = [27, 0], sizes = [8, 8], strides = [1, 1]} : vector<88x8xf32> to vector<8x8xf32>
    %c0_104 = arith.constant 0 : index
    %c24_105 = arith.constant 24 : index
    %c0_106 = arith.constant 0 : index
    %125 = vector.load %arg5[%c0_104, %c24_105, %c0_106] : memref<1x64x8xf32, #tpu.memory_space<vmem>>, vector<1x8x8xf32>
    %126 = vector.shape_cast %125 : vector<1x8x8xf32> to vector<8x8xf32>
    %127 = vector.shape_cast %124 : vector<8x8xf32> to vector<1x8x8xf32>
    tpu.vector_store %arg5[%c0_104, %c24_105, %c0_106], %127 {strides = array<i32>} : memref<1x64x8xf32, #tpu.memory_space<vmem>>, vector<1x8x8xf32>,
    %128 = vector.extract_strided_slice %111 {offsets = [36, 0], sizes = [8, 8], strides = [1, 1]} : vector<88x8xf32> to vector<8x8xf32>
    %c0_107 = arith.constant 0 : index
    %c32_108 = arith.constant 32 : index
    %c0_109 = arith.constant 0 : index
    %129 = vector.load %arg5[%c0_107, %c32_108, %c0_109] : memref<1x64x8xf32, #tpu.memory_space<vmem>>, vector<1x8x8xf32>
    %130 = vector.shape_cast %129 : vector<1x8x8xf32> to vector<8x8xf32>
    %131 = vector.shape_cast %128 : vector<8x8xf32> to vector<1x8x8xf32>
    tpu.vector_store %arg5[%c0_107, %c32_108, %c0_109], %131 {strides = array<i32>} : memref<1x64x8xf32, #tpu.memory_space<vmem>>, vector<1x8x8xf32>,
    %132 = vector.extract_strided_slice %111 {offsets = [45, 0], sizes = [8, 8], strides = [1, 1]} : vector<88x8xf32> to vector<8x8xf32>
    %c0_110 = arith.constant 0 : index
    %c40_111 = arith.constant 40 : index
    %c0_112 = arith.constant 0 : index
    %133 = vector.load %arg5[%c0_110, %c40_111, %c0_112] : memref<1x64x8xf32, #tpu.memory_space<vmem>>, vector<1x8x8xf32>
    %134 = vector.shape_cast %133 : vector<1x8x8xf32> to vector<8x8xf32>
    %135 = vector.shape_cast %132 : vector<8x8xf32> to vector<1x8x8xf32>
    tpu.vector_store %arg5[%c0_110, %c40_111, %c0_112], %135 {strides = array<i32>} : memref<1x64x8xf32, #tpu.memory_space<vmem>>, vector<1x8x8xf32>,
    %136 = vector.extract_strided_slice %111 {offsets = [54, 0], sizes = [8, 8], strides = [1, 1]} : vector<88x8xf32> to vector<8x8xf32>
    %c0_113 = arith.constant 0 : index
    %c48_114 = arith.constant 48 : index
    %c0_115 = arith.constant 0 : index
    %137 = vector.load %arg5[%c0_113, %c48_114, %c0_115] : memref<1x64x8xf32, #tpu.memory_space<vmem>>, vector<1x8x8xf32>
    %138 = vector.shape_cast %137 : vector<1x8x8xf32> to vector<8x8xf32>
    %139 = vector.shape_cast %136 : vector<8x8xf32> to vector<1x8x8xf32>
    tpu.vector_store %arg5[%c0_113, %c48_114, %c0_115], %139 {strides = array<i32>} : memref<1x64x8xf32, #tpu.memory_space<vmem>>, vector<1x8x8xf32>,
    %140 = vector.extract_strided_slice %111 {offsets = [63, 0], sizes = [8, 8], strides = [1, 1]} : vector<88x8xf32> to vector<8x8xf32>
    %c0_116 = arith.constant 0 : index
    %c56_117 = arith.constant 56 : index
    %c0_118 = arith.constant 0 : index
    %141 = vector.load %arg5[%c0_116, %c56_117, %c0_118] : memref<1x64x8xf32, #tpu.memory_space<vmem>>, vector<1x8x8xf32>
    %142 = vector.shape_cast %141 : vector<1x8x8xf32> to vector<8x8xf32>
    %143 = vector.shape_cast %140 : vector<8x8xf32> to vector<1x8x8xf32>
    tpu.vector_store %arg5[%c0_116, %c56_117, %c0_118], %143 {strides = array<i32>} : memref<1x64x8xf32, #tpu.memory_space<vmem>>, vector<1x8x8xf32>,
    %c0_119 = arith.constant 0 : index
    %c0_120 = arith.constant 0 : index
    %c0_121 = arith.constant 0 : index
    %144 = vector.load %arg5[%c0_119, %c0_120, %c0_121] : memref<1x64x8xf32, #tpu.memory_space<vmem>>, vector<1x64x8xf32>
    %145 = vector.shape_cast %144 : vector<1x64x8xf32> to vector<64x8xf32>
    %c0_122 = arith.constant 0 : index
    %c0_123 = arith.constant 0 : index
    %146 = vector.load %arg8[%c0_122, %c0_123] : memref<1x8xf32, #tpu.memory_space<vmem>>, vector<1x8xf32>
    %cst_124 = arith.constant dense<0.000000e+00> : vector<8xf32>
    %147 = vector.multi_reduction <add>, %145, %cst_124 [0] : vector<64x8xf32> to vector<8xf32>
    %148 = vector.shape_cast %147 : vector<8xf32> to vector<1x8xf32>
    %149 = arith.addf %146, %148 : vector<1x8xf32>
    %c0_125 = arith.constant 0 : index
    %c0_126 = arith.constant 0 : index
    %150 = vector.load %arg8[%c0_125, %c0_126] : memref<1x8xf32, #tpu.memory_space<vmem>>, vector<1x8xf32>
    tpu.vector_store %arg8[%c0_125, %c0_126], %149 {strides = array<i32>} : memref<1x8xf32, #tpu.memory_space<vmem>>, vector<1x8xf32>,
    %c0_127 = arith.constant 0 : index
    %c0_128 = arith.constant 0 : index
    %151 = vector.load %arg9[%c0_127, %c0_128] : memref<1x8xf32, #tpu.memory_space<vmem>>, vector<1x8xf32>
    %152 = arith.mulf %145, %145 : vector<64x8xf32>
    %cst_129 = arith.constant dense<0.000000e+00> : vector<8xf32>
    %153 = vector.multi_reduction <add>, %152, %cst_129 [0] : vector<64x8xf32> to vector<8xf32>
    %154 = vector.shape_cast %153 : vector<8xf32> to vector<1x8xf32>
    %155 = arith.addf %151, %154 : vector<1x8xf32>
    %c0_130 = arith.constant 0 : index
    %c0_131 = arith.constant 0 : index
    %156 = vector.load %arg9[%c0_130, %c0_131] : memref<1x8xf32, #tpu.memory_space<vmem>>, vector<1x8xf32>
    tpu.vector_store %arg9[%c0_130, %c0_131], %155 {strides = array<i32>} : memref<1x8xf32, #tpu.memory_space<vmem>>, vector<1x8xf32>,
    return
  }
  func.func @transform_0(%arg0: i32) -> (i32, i32, i32, i32) {
    %c0_i32 = arith.constant 0 : i32
    %c0_i32_0 = arith.constant 0 : i32
    %c0_i32_1 = arith.constant 0 : i32
    %c0_i32_2 = arith.constant 0 : i32
    return %c0_i32, %arg0, %c0_i32_0, %c0_i32_1 : i32, i32, i32, i32
  }
  func.func @transform_1(%arg0: i32) -> (i32, i32, i32) {
    %c0_i32 = arith.constant 0 : i32
    %c0_i32_0 = arith.constant 0 : i32
    %c0_i32_1 = arith.constant 0 : i32
    %c0_i32_2 = arith.constant 0 : i32
    return %c0_i32, %c0_i32_0, %c0_i32_1 : i32, i32, i32
  }
  func.func @transform_2(%arg0: i32) -> (i32, i32) {
    %c0_i32 = arith.constant 0 : i32
    %c0_i32_0 = arith.constant 0 : i32
    %c0_i32_1 = arith.constant 0 : i32
    return %c0_i32, %c0_i32_0 : i32, i32
  }
  func.func @transform_3(%arg0: i32) -> (i32, i32, i32) {
    %c0_i32 = arith.constant 0 : i32
    %c0_i32_0 = arith.constant 0 : i32
    %c0_i32_1 = arith.constant 0 : i32
    return %arg0, %c0_i32, %c0_i32_0 : i32, i32, i32
  }
  func.func @transform_4(%arg0: i32) -> (i32, i32, i32) {
    %c0_i32 = arith.constant 0 : i32
    %c0_i32_0 = arith.constant 0 : i32
    %c0_i32_1 = arith.constant 0 : i32
    return %arg0, %c0_i32, %c0_i32_0 : i32, i32, i32
  }
  func.func @transform_5(%arg0: i32) -> (i32, i32) {
    %c0_i32 = arith.constant 0 : i32
    %c0_i32_0 = arith.constant 0 : i32
    %c0_i32_1 = arith.constant 0 : i32
    return %c0_i32, %c0_i32_0 : i32, i32
  }
  func.func @transform_6(%arg0: i32) -> (i32, i32) {
    %c0_i32 = arith.constant 0 : i32
    %c0_i32_0 = arith.constant 0 : i32
    %c0_i32_1 = arith.constant 0 : i32
    return %c0_i32, %c0_i32_0 : i32, i32
  }
  func.func @transform_7(%arg0: i32) -> (i32, i32) {
    %c0_i32 = arith.constant 0 : i32
    %c0_i32_0 = arith.constant 0 : i32
    %c0_i32_1 = arith.constant 0 : i32
    return %c0_i32, %c0_i32_0 : i32, i32
  }
  func.func @transform_8(%arg0: i32) -> (i32, i32) {
    %c0_i32 = arith.constant 0 : i32
    %c0_i32_0 = arith.constant 0 : i32
    %c0_i32_1 = arith.constant 0 : i32
    return %c0_i32, %c0_i32_0 : i32, i32
  }
}

</mosaic_0001>

<bundles_post_ra>
// kernel: tpu_custom_call.1
= control target key start
LH: loop header
LB: loop body
LE: loop exit
PB: predicated region body
PF: predicated region fallthrough
CT: control target
= control target key end

     0   :  { %14 = vsyncpa [#allocation4], 0  ;;  %s3456_s0 = inlined_call_operand.vmem [shape: f32[4,2,104,4], index: 0, kind: input, shape index: {}]   ;;  %s3457_s1 = inlined_call_operand.vmem [shape: bf16[9,4,8], index: 1, kind: input, shape index: {}]   ;;  %s3458_s2 = inlined_call_operand.vmem [shape: bf16[4,8], index: 2, kind: input, shape index: {}]   ;;  %s3459_s3 = inlined_call_operand.vmem [shape: f32[2,64,8], index: 3, kind: output, shape index: {0}]   ;;  %s3460_s4 = inlined_call_operand.vmem [shape: f32[2,64,8], index: 4, kind: output, shape index: {1}]   ;;  %s3461_s5 = inlined_call_operand.hbm [shape: f32[1,8], index: 5, kind: output, shape index: {2}]   ;;  %s3462_s6 = inlined_call_operand.hbm [shape: f32[1,8], index: 6, kind: output, shape index: {3}]   ;;  %s3463_s7 = inlined_call_operand.hbm [shape: f32[1,8], index: 7, kind: output, shape index: {4}]   ;;  %s3464_s8 = inlined_call_operand.hbm [shape: f32[1,8], index: 8, kind: output, shape index: {5}]  }
   0x1   :  { %15 = vsyncpa [#allocation6], 0 }
   0x2   :  { %16 = vsyncpa [#allocation9], 0  ;;  %s2831_s27 = smov 0   ;;  %s2833_s28 = smov 0  }
   0x3   :  { %s2835_s29 = smov 0  }
   0x4 LB: > { %s2847_s30 = sadd.s32 4294967295, %s2779_s29   ;;  %s2850_s9 = sadd.s32 1, %s2779_s29   ;;  %s2779_s29 = sphi %s2835_s29, %s3467_s29   ;;  %s2775_s28 = sphi %s2833_s28, %s3466_s28   ;;  %s2771_s27 = sphi %s2831_s27, %s3465_s27  }
   0x5   : > { %s26_s10 = ssub.s32 %s2779_s29, %s2850_s9  ;;  %s29_s11 = sadd.s32 1, %s2775_s28 }
   0x6   : > { %p27_p0 = scmp.eq.s32.totalorder %s26_s10, 0  ;;  %p36_p1 = scmp.ne.s32.totalorder %s2775_s28, %s2771_s27 }
   0x7   : > { %p37_p2 = scmp.eq.s32.totalorder %s2779_s29, 0  ;;  %p2129_p4 = scmp.ge.s32.totalorder %s2779_s29, 2 }
   0x8   : > { %s2859_s12 = scalar_select %p27_p0, %s2775_s28, %s29_s11  }
   0x9   : > { %p38_p3 = por %p37_p2, %p36_p1  ;;  %246 = sbr.rel (%p2129_p4) target bundleno = 47 (0x2f), region = 24 }
  0x10   : > { %249 = sbr.rel (!%p38_p3) target bundleno = 47 (0x2f), region = 28  ;;  %s251_s13 = sand.u32 (%p38_p3), 1, %s2775_s28  }
  0x11   : > { %s2586_s14 = smul.u32 (%p38_p3), 104, %s2779_s29 }
  0x12   : > { %s2585_s15 = smul.u32 (%p38_p3), 416, %s251_s13 }
  0x13   : > { %s2867_s18 = scalar_lea.vmem (%p38_p3), %s3456_s0, %s2586_s14 }
  0x14   : > { %v386_v0 = vld [vmem:[%s2867_s18] sm:$0xff] (%p38_p3)  ;;  %v388_v1 = vld [vmem:[%s2867_s18 + $0x8] sm:$0xff] (%p38_p3)  ;;  %v390_v2 = vld [vmem:[%s2867_s18 + $0x10] sm:$0xff] (%p38_p3)  ;;  %s2872_s19 = scalar_lea.vmem (%p38_p3), [#allocation2], %s2585_s15 }
  0x15   : > { %387 = vst [vmem:[%s2872_s19] sm:$0xff] (%p38_p3), %v386_v0  ;;  %389 = vst [vmem:[%s2872_s19 + $0x8] sm:$0xff] (%p38_p3), %v388_v1  ;;  %v392_v3 = vld [vmem:[%s2867_s18 + $0x18] sm:$0xff] (%p38_p3)  ;;  %v394_v4 = vld [vmem:[%s2867_s18 + $0x20] sm:$0xff] (%p38_p3) }
  0x16   : > { %391 = vst [vmem:[%s2872_s19 + $0x10] sm:$0xff] (%p38_p3), %v390_v2  ;;  %v396_v5 = vld [vmem:[%s2867_s18 + $0x28] sm:$0xff] (%p38_p3)  ;;  %393 = vst [vmem:[%s2872_s19 + $0x18] sm:$0xff] (%p38_p3), %v392_v3  ;;  %v398_v6 = vld [vmem:[%s2867_s18 + $0x30] sm:$0xff] (%p38_p3) }
  0x17   : > { %395 = vst [vmem:[%s2872_s19 + $0x20] sm:$0xff] %v394_v4  ;;  %397 = vst [vmem:[%s2872_s19 + $0x28] sm:$0xff] %v396_v5  ;;  %v400_v7 = vld [vmem:[%s2867_s18 + $0x38] sm:$0xff]  ;;  %v402_v8 = vld [vmem:[%s2867_s18 + $0x40] sm:$0xff] }
  0x18   : > { %399 = vst [vmem:[%s2872_s19 + $0x30] sm:$0xff] %v398_v6  ;;  %401 = vst [vmem:[%s2872_s19 + $0x38] sm:$0xff] %v400_v7  ;;  %v404_v9 = vld [vmem:[%s2867_s18 + $0x48] sm:$0xff]  ;;  %v406_v10 = vld [vmem:[%s2867_s18 + $0x50] sm:$0xff] }
  0x19   : > { %403 = vst [vmem:[%s2872_s19 + $0x40] sm:$0xff] %v402_v8  ;;  %v408_v11 = vld [vmem:[%s2867_s18 + $0x58] sm:$0xff]  ;;  %405 = vst [vmem:[%s2872_s19 + $0x48] sm:$0xff] %v404_v9  ;;  %v410_v12 = vld [vmem:[%s2867_s18 + $0x60] sm:$0xff] }
  0x1a   : > { %407 = vst [vmem:[%s2872_s19 + $0x50] sm:$0xff] %v406_v10  ;;  %409 = vst [vmem:[%s2872_s19 + $0x58] sm:$0xff] %v408_v11  ;;  %v412_v13 = vld [vmem:[%s2867_s18 + $0xd0] sm:$0xff]  ;;  %v414_v14 = vld [vmem:[%s2867_s18 + $0xd8] sm:$0xff] }
  0x1b   : > { %411 = vst [vmem:[%s2872_s19 + $0x60] sm:$0xff] %v410_v12  ;;  %413 = vst [vmem:[%s2872_s19 + $0x68] sm:$0xff] %v412_v13  ;;  %v416_v15 = vld [vmem:[%s2867_s18 + $0xe0] sm:$0xff]  ;;  %v418_v16 = vld [vmem:[%s2867_s18 + $0xe8] sm:$0xff] }
  0x1c   : > { %415 = vst [vmem:[%s2872_s19 + $0x70] sm:$0xff] %v414_v14  ;;  %v420_v17 = vld [vmem:[%s2867_s18 + $0xf0] sm:$0xff]  ;;  %417 = vst [vmem:[%s2872_s19 + $0x78] sm:$0xff] %v416_v15  ;;  %v422_v18 = vld [vmem:[%s2867_s18 + $0xf8] sm:$0xff] }
  0x1d   : > { %419 = vst [vmem:[%s2872_s19 + $0x80] sm:$0xff] %v418_v16  ;;  %421 = vst [vmem:[%s2872_s19 + $0x88] sm:$0xff] %v420_v17  ;;  %v424_v19 = vld [vmem:[%s2867_s18 + $0x100] sm:$0xff]  ;;  %v426_v20 = vld [vmem:[%s2867_s18 + $0x108] sm:$0xff] }
  0x1e   : > { %423 = vst [vmem:[%s2872_s19 + $0x90] sm:$0xff] %v422_v18  ;;  %425 = vst [vmem:[%s2872_s19 + $0x98] sm:$0xff] %v424_v19  ;;  %v428_v21 = vld [vmem:[%s2867_s18 + $0x110] sm:$0xff]  ;;  %v430_v22 = vld [vmem:[%s2867_s18 + $0x118] sm:$0xff] }
  0x1f   : > { %427 = vst [vmem:[%s2872_s19 + $0xa0] sm:$0xff] %v426_v20  ;;  %v432_v23 = vld [vmem:[%s2867_s18 + $0x120] sm:$0xff]  ;;  %429 = vst [vmem:[%s2872_s19 + $0xa8] sm:$0xff] %v428_v21  ;;  %v434_v24 = vld [vmem:[%s2867_s18 + $0x128] sm:$0xff] }
  0x20   : > { %431 = vst [vmem:[%s2872_s19 + $0xb0] sm:$0xff] %v430_v22  ;;  %433 = vst [vmem:[%s2872_s19 + $0xb8] sm:$0xff] %v432_v23  ;;  %v436_v25 = vld [vmem:[%s2867_s18 + $0x130] sm:$0xff]  ;;  %v438_v26 = vld [vmem:[%s2867_s18 + $0x1a0] sm:$0xff] }
  0x21   : > { %435 = vst [vmem:[%s2872_s19 + $0xc0] sm:$0xff] %v434_v24  ;;  %437 = vst [vmem:[%s2872_s19 + $0xc8] sm:$0xff] %v436_v25  ;;  %v440_v27 = vld [vmem:[%s2867_s18 + $0x1a8] sm:$0xff]  ;;  %v442_v28 = vld [vmem:[%s2867_s18 + $0x1b0] sm:$0xff] }
  0x22   : > { %439 = vst [vmem:[%s2872_s19 + $0xd0] sm:$0xff] %v438_v26  ;;  %v444_v29 = vld [vmem:[%s2867_s18 + $0x1b8] sm:$0xff]  ;;  %441 = vst [vmem:[%s2872_s19 + $0xd8] sm:$0xff] %v440_v27  ;;  %v446_v30 = vld [vmem:[%s2867_s18 + $0x1c0] sm:$0xff] }
  0x23   : > { %443 = vst [vmem:[%s2872_s19 + $0xe0] sm:$0xff] %v442_v28  ;;  %445 = vst [vmem:[%s2872_s19 + $0xe8] sm:$0xff] %v444_v29  ;;  %v448_v31 = vld [vmem:[%s2867_s18 + $0x1c8] sm:$0xff]  ;;  %v450_v32 = vld [vmem:[%s2867_s18 + $0x1d0] sm:$0xff] }
  0x24   : > { %447 = vst [vmem:[%s2872_s19 + $0xf0] sm:$0xff] %v446_v30  ;;  %449 = vst [vmem:[%s2872_s19 + $0xf8] sm:$0xff] %v448_v31  ;;  %v452_v33 = vld [vmem:[%s2867_s18 + $0x1d8] sm:$0xff]  ;;  %v454_v34 = vld [vmem:[%s2867_s18 + $0x1e0] sm:$0xff] }
  0x25   : > { %451 = vst [vmem:[%s2872_s19 + $0x100] sm:$0xff] %v450_v32  ;;  %v456_v35 = vld [vmem:[%s2867_s18 + $0x1e8] sm:$0xff]  ;;  %453 = vst [vmem:[%s2872_s19 + $0x108] sm:$0xff] %v452_v33  ;;  %v458_v36 = vld [vmem:[%s2867_s18 + $0x1f0] sm:$0xff] }
  0x26   : > { %455 = vst [vmem:[%s2872_s19 + $0x110] sm:$0xff] %v454_v34  ;;  %457 = vst [vmem:[%s2872_s19 + $0x118] sm:$0xff] %v456_v35  ;;  %v460_v37 = vld [vmem:[%s2867_s18 + $0x1f8] sm:$0xff]  ;;  %v462_v38 = vld [vmem:[%s2867_s18 + $0x200] sm:$0xff] }
  0x27   : > { %459 = vst [vmem:[%s2872_s19 + $0x120] sm:$0xff] %v458_v36  ;;  %461 = vst [vmem:[%s2872_s19 + $0x128] sm:$0xff] %v460_v37  ;;  %v464_v39 = vld [vmem:[%s2867_s18 + $0x270] sm:$0xff]  ;;  %v466_v40 = vld [vmem:[%s2867_s18 + $0x278] sm:$0xff] }
  0x28   : > { %463 = vst [vmem:[%s2872_s19 + $0x130] sm:$0xff] %v462_v38  ;;  %v468_v41 = vld [vmem:[%s2867_s18 + $0x280] sm:$0xff]  ;;  %465 = vst [vmem:[%s2872_s19 + $0x138] sm:$0xff] %v464_v39  ;;  %v470_v42 = vld [vmem:[%s2867_s18 + $0x288] sm:$0xff] }
  0x29   : > { %467 = vst [vmem:[%s2872_s19 + $0x140] sm:$0xff] %v466_v40  ;;  %469 = vst [vmem:[%s2872_s19 + $0x148] sm:$0xff] %v468_v41  ;;  %v472_v43 = vld [vmem:[%s2867_s18 + $0x290] sm:$0xff]  ;;  %v474_v44 = vld [vmem:[%s2867_s18 + $0x298] sm:$0xff] }
  0x2a   : > { %471 = vst [vmem:[%s2872_s19 + $0x150] sm:$0xff] %v470_v42  ;;  %473 = vst [vmem:[%s2872_s19 + $0x158] sm:$0xff] %v472_v43  ;;  %v476_v45 = vld [vmem:[%s2867_s18 + $0x2a0] sm:$0xff]  ;;  %v478_v46 = vld [vmem:[%s2867_s18 + $0x2a8] sm:$0xff] }
  0x2b   : > { %475 = vst [vmem:[%s2872_s19 + $0x160] sm:$0xff] %v474_v44  ;;  %v480_v47 = vld [vmem:[%s2867_s18 + $0x2b0] sm:$0xff]  ;;  %477 = vst [vmem:[%s2872_s19 + $0x168] sm:$0xff] %v476_v45  ;;  %v482_v48 = vld [vmem:[%s2867_s18 + $0x2b8] sm:$0xff] }
  0x2c   : > { %479 = vst [vmem:[%s2872_s19 + $0x170] sm:$0xff] %v478_v46  ;;  %481 = vst [vmem:[%s2872_s19 + $0x178] sm:$0xff] %v480_v47  ;;  %v484_v49 = vld [vmem:[%s2867_s18 + $0x2c0] sm:$0xff]  ;;  %v486_v50 = vld [vmem:[%s2867_s18 + $0x2c8] sm:$0xff] }
  0x2d   : > { %483 = vst [vmem:[%s2872_s19 + $0x180] sm:$0xff] %v482_v48  ;;  %485 = vst [vmem:[%s2872_s19 + $0x188] sm:$0xff] %v484_v49  ;;  %v488_v51 = vld [vmem:[%s2867_s18 + $0x2d0] sm:$0xff] }
  0x2e   : > { %487 = vst [vmem:[%s2872_s19 + $0x190] sm:$0xff] %v486_v50  ;;  %489 = vst [vmem:[%s2872_s19 + $0x198] sm:$0xff] %v488_v51 }
  0x2f PF: > { %p2131_p5 = scmp.ge.s32.totalorder %s2779_s29, 1  ;;  %p494_p6 = scmp.lt.s32.totalorder %s2779_s29, 3 }
  0x31   : > { %p495_p7 = pnand %p2131_p5, %p494_p6 }
  0x32   : > { %s501_s20 = sand.u32 (!%p495_p7), 1, %s2771_s27   ;;  %p539_p8 = scmp.lt.s32.totalorder (!%p495_p7), %s2847_s30, 1 }
  0x33   : > { %498 = sbr.rel (%p495_p7) target bundleno = 511 (0x1ff), region = 66  ;;  %p2136_p9 = scmp.ne.s32.totalorder (!%p495_p7), %s2847_s30, 0 }
  0x34   : > { %s2587_s21 = smul.u32 (!%p495_p7), 416, %s501_s20 }
  0x36   : > { %s2990_s29 = scalar_lea.vmem (!%p495_p7), [#allocation2], %s2587_s21 }
  0x3a   : > { %s540_s22 = scalar_select %p539_p8, %s2847_s30, 1 }
  0x3b   : > { %553 = sbr.rel (%p2136_p9) target bundleno = 66 (0x42), region = 74  ;;  %vm554_vm0 = vcmask (!%p2136_p9), 57344   ;;  %v2781_v52 = vmov (!%p2136_p9), 0.0  }
  0x3c   : > { %s2270_s23 = sshll.u32 %s540_s22, 6  ;;  %555 = vst.msk [vmem:[#allocation3] sm:$0x1] (!%p2136_p9), %vm554_vm0, %v2781_v52  ;;  %556 = vst.msk [vmem:[#allocation5] sm:$0x1] (!%p2136_p9), %vm554_vm0, %v2781_v52 }
  0x3d   : > { %s2983_s26 = scalar_lea.vmem %s3459_s3, %s2270_s23  ;;  %s2988_s13 = scalar_lea.vmem %s3460_s4, %s2270_s23  ;;  %557 = vst.msk [vmem:[#allocation7] sm:$0x1] (!%p2136_p9), %vm554_vm0, %v2781_v52  ;;  %558 = vst.msk [vmem:[#allocation8] sm:$0x1] (!%p2136_p9), %vm554_vm0, %v2781_v52 }
  0x42 PF: > { %v2148_v53 = vld [vmem:[%s3457_s1 + $0x2] sm:$0x3]  ;;  %vm616_vm1 = vcmask 1041408   ;;  %v2197_v54 = vld [vmem:[%s3457_s1 + $0x8] sm:$0x3]  ;;  %v2138_v58 = vld [vmem:[%s2990_s29 + $0x70] sm:$0xff] }
  0x43   : > { %v2137_v55 = vld [vmem:[%s2990_s29 + $0x68] sm:$0xff]  ;;  %2575 = vmatprep.subr.msk.bf16.mxu1 %vm616_vm1, %v2148_v53  ;;  %2579 = vmatprep.subr.msk.bf16.mxu0 %vm616_vm1, %v2197_v54  ;;  %v618_v56 = vsel %vm616_vm1, %v2148_v53, 0  ;;  %v1091_v57 = vsel %vm616_vm1, %v2197_v54, 0  ;;  %vm597_vm2 = vcmask 31744   ;;  %v2186_v59 = vld [vmem:[%s2990_s29 + $0x138] sm:$0xff]  ;;  %v2187_v60 = vld [vmem:[%s2990_s29 + $0x140] sm:$0xff] }
  0x44   : > { %2343 = vmatpush3.bf16.msra.mxu1 %v618_v56  ;;  %2399 = vmatpush3.bf16.msra.mxu0 %v1091_v57  ;;  %v589_v61 = vpack.c.bf16 %v2138_v58, %v2137_v55  ;;  %v3007_v62 = vpack.c.bf16 %v2187_v60, %v2186_v59  ;;  %v2139_v63 = vld [vmem:[%s2990_s29 + $0x78] sm:$0xff]  ;;  %v2140_v0 = vld [vmem:[%s2990_s29 + $0x80] sm:$0xff]  ;;  %v2188_v1 = vld [vmem:[%s2990_s29 + $0x148] sm:$0xff]  ;;  %vm1692_vm3 = vcmask 57344   ;;  %vm1694_vm4 = vcmask 64514   ;;  %p2604_p10 = scmp.eq.s32.totalorder %s2847_s30, 1 }
  0x45   : > { %v590_v2 = vpack.c.bf16 %v2140_v0, %v2139_v63  ;;  %v2189_v3 = vld [vmem:[%s2990_s29 + $0x150] sm:$0xff]  ;;  %v2215_v4 = vld [vmem:[%s3457_s1 + $0xa] sm:$0x3]  ;;  %v576_v5 = vld [vmem:[%s3457_s1] sm:$0x3]  ;;  %vm1688_vm5 = vcmask 64512  }
  0x46   : > { %2344 = vmatprep.mubr.msk.bf16.mxu1 %vm597_vm2, %v589_v61  ;;  %2400 = vmatprep.mubr.msk.bf16.mxu0 %vm597_vm2, %v3007_v62  ;;  %v3022_v6 = vpack.c.bf16 %v2189_v3, %v2188_v1  ;;  %v1218_v7 = vsel %vm616_vm1, %v2215_v4, 0  ;;  %v717_v8 = vsel %vm616_vm1, %v576_v5, 0  ;;  %v2141_v9 = vld [vmem:[%s2990_s29 + $0x88] sm:$0xff]  ;;  %v2142_v10 = vld [vmem:[%s2990_s29 + $0x90] sm:$0xff]  ;;  %v2190_v11 = vld [vmem:[%s2990_s29 + $0x158] sm:$0xff]  ;;  %vm1696_vm6 = vcmask 58368  }
  0x47   : > { %2345 = vmatmul.mubr.msk.bf16.vlgmr.msra.gmra.mrb[0].mxu1 %vm597_vm2, %v590_v2  ;;  %2580 = vmatprep.subr.msk.bf16.mxu0 %vm616_vm1, %v2215_v4  ;;  %v591_v12 = vpack.c.bf16 %v2142_v10, %v2141_v9  ;;  %v2191_v13 = vld [vmem:[%s2990_s29 + $0x160] sm:$0xff]  ;;  %v2143_v15 = vld [vmem:[%s2990_s29 + $0x98] sm:$0xff]  ;;  %v2192_v17 = vld [vmem:[%s2990_s29 + $0x168] sm:$0xff]  ;;  %vm1698_vm7 = vcmask 64515   ;;  %vm1690_vm8 = vcmask 64513   ;;  %vm1708_vm9 = vcmask 61440  }
  0x48   : > { %2401 = vmatmul.mubr.msk.bf16.vlgmr.msra.gmra.mrb[0].mxu0 %vm597_vm2, %v3022_v6  ;;  %2576 = vmatprep.subr.msk.bf16.mxu1 %vm616_vm1, %v576_v5  ;;  %v3035_v14 = vpack.c.bf16 %v2191_v13, %v2190_v11  ;;  %v2144_v16 = vld [vmem:[%s2990_s29 + $0xa0] sm:$0xff]  ;;  %v2193_v18 = vld [vmem:[%s2990_s29 + $0x170] sm:$0xff]  ;;  %v2145_v19 = vld [vmem:[%s2990_s29 + $0xa8] sm:$0xff]  ;;  %vm1710_vm10 = vcmask 64518   ;;  %vm1700_vm11 = vcmask 59392   ;;  %vm1702_vm12 = vcmask 64516  }
  0x49   : > { %2413 = vmatpush3.bf16.msra.mxu0 %v1218_v7  ;;  %2357 = vmatpush3.bf16.msra.mxu1 %v717_v8  ;;  %v2146_v20 = vld [vmem:[%s2990_s29 + $0xb0] sm:$0xff]  ;;  %v2194_v21 = vld [vmem:[%s2990_s29 + $0x178] sm:$0xff]  ;;  %v2195_v22 = vld [vmem:[%s2990_s29 + $0x180] sm:$0xff]  ;;  %v592_v23 = vpack.c.bf16 %v2144_v16, %v2143_v15  ;;  %v3048_v24 = vpack.c.bf16 %v2193_v18, %v2192_v17  ;;  %vm1712_vm13 = vcmask 62464   ;;  %vm1714_vm14 = vcmask 64519   ;;  %s2784_s19 = smov [#allocation7]  }
  0x4a   : > { %2348 = vmatprep.mubr.msk.bf16.mxu1 %vm597_vm2, %v591_v12  ;;  %2404 = vmatprep.mubr.msk.bf16.mxu0 %vm597_vm2, %v3035_v14  ;;  %v593_v25 = vpack.c.bf16 %v2146_v20, %v2145_v19  ;;  %v3050_v26 = vpack.c.bf16 %v2195_v22, %v2194_v21  ;;  %v2222_v27 = vld [vmem:[%s3457_s1 + $0xc] sm:$0x3]  ;;  %v2161_v28 = vld [vmem:[%s3457_s1 + $0x4] sm:$0x3]  ;;  %v2147_v29 = vld [vmem:[%s2990_s29 + $0xb8] sm:$0xff]  ;;  %vm1704_vm15 = vcmask 60416  }
  0x4b   : > { %2581 = vmatprep.subr.msk.bf16.mxu0 %vm616_vm1, %v2222_v27  ;;  %2577 = vmatprep.subr.msk.bf16.mxu1 %vm616_vm1, %v2161_v28  ;;  %v2196_v30 = vld [vmem:[%s2990_s29 + $0x188] sm:$0xff]  ;;  %v559_v31 = vld [vmem:[%s2990_s29] sm:$0xff]  ;;  %v2204_v33 = vld [vmem:[%s2990_s29 + $0xd1] sm:$0xff]  ;;  %v594_v35 = vpack.c.bf16 %v2147_v29, %v2147_v29  ;;  %v835_v49 = vsel %vm616_vm1, %v2161_v28, 0  ;;  %v1345_v51 = vsel %vm616_vm1, %v2222_v27, 0  ;;  %vm1706_vm0 = vcmask 64517  }
  0x4c   : > { %v560_v32 = vld [vmem:[%s2990_s29 + $0x8] sm:$0xff]  ;;  %v2205_v34 = vld [vmem:[%s2990_s29 + $0xd9] sm:$0xff]  ;;  %v3072_v36 = vpack.c.bf16 %v2196_v30, %v2196_v30  ;;  %v561_v39 = vld [vmem:[%s2990_s29 + $0x10] sm:$0xff]  ;;  %s1988_s20 = sshll.u32 %s2784_s19, 4  ;;  %s2785_s21 = smov [#allocation8]   ;;  %s3338_s20 = int_to_ptr.vmem [resolvable:$true] %s1988_s20 }
  0x4d   : > { %v570_v37 = vpack.c.bf16 %v560_v32, %v559_v31  ;;  %v1191_v38 = vpack.c.bf16 %v2205_v34, %v2204_v33  ;;  %v562_v40 = vld [vmem:[%s2990_s29 + $0x18] sm:$0xff]  ;;  %v2206_v41 = vld [vmem:[%s2990_s29 + $0xe1] sm:$0xff]  ;;  %v2207_v42 = vld [vmem:[%s2990_s29 + $0xe9] sm:$0xff]  ;;  %s1999_s22 = sshll.u32 %s2785_s21, 4  ;;  %s3359_s22 = int_to_ptr.vmem [resolvable:$true] %s1999_s22 }
  0x4e   : > { %v563_v43 = vld [vmem:[%s2990_s29 + $0x20] sm:$0xff]  ;;  %v564_v44 = vld [vmem:[%s2990_s29 + $0x28] sm:$0xff]  ;;  %v571_v45 = vpack.c.bf16 %v562_v40, %v561_v39  ;;  %v2208_v46 = vld [vmem:[%s2990_s29 + $0xf1] sm:$0xff]  ;;  %v1192_v48 = vpack.c.bf16 %v2207_v42, %v2206_v41 }
  0x4f   : > { %2349 = vmatmul.mubr.msk.bf16.gmra.mrb[4].mxu1 %vm597_vm2, %v592_v23  ;;  %v2209_v47 = vld [vmem:[%s2990_s29 + $0xf9] sm:$0xff]  ;;  %v572_v50 = vpack.c.bf16 %v564_v44, %v563_v43  ;;  %v565_v53 = vld [vmem:[%s2990_s29 + $0x30] sm:$0xff]  ;;  %v2240_v54 = vld [vmem:[%s3457_s1 + $0xe] sm:$0x3] }
  0x50   : > { %2405 = vmatmul.mubr.msk.bf16.gmra.mrb[4].mxu0 %vm597_vm2, %v3048_v24  ;;  %2352 = vmatprep.mubr.msk.bf16.mxu1 %vm597_vm2, %v593_v25  ;;  %v1193_v52 = vpack.c.bf16 %v2209_v47, %v2208_v46  ;;  %v566_v55 = vld [vmem:[%s2990_s29 + $0x38] sm:$0xff]  ;;  %v2210_v56 = vld [vmem:[%s2990_s29 + $0x101] sm:$0xff]  ;;  %v2211_v58 = vld [vmem:[%s2990_s29 + $0x109] sm:$0xff]  ;;  %v1472_v23 = vsel %vm616_vm1, %v2240_v54, 0 }
  0x51   : > { %2408 = vmatprep.mubr.msk.bf16.mxu0 %vm597_vm2, %v3050_v26  ;;  %v2179_v57 = vld [vmem:[%s3457_s1 + $0x6] sm:$0x3]  ;;  %v568_v60 = vld [vmem:[%s2990_s29 + $0x48] sm:$0xff]  ;;  %v2212_v61 = vld [vmem:[%s2990_s29 + $0x111] sm:$0xff]  ;;  %v573_v0 = vpack.c.bf16 %v566_v55, %v565_v53  ;;  %v1194_v1 = vpack.c.bf16 %v2211_v58, %v2210_v56 }
  0x52   : > { %v567_v59 = vld [vmem:[%s2990_s29 + $0x40] sm:$0xff]  ;;  %v569_v4 = vld [vmem:[%s2990_s29 + $0x50] sm:$0xff]  ;;  %v963_v21 = vsel %vm616_vm1, %v2179_v57, 0  ;;  %v2169_v40 = vld [vmem:[%s2990_s29 + $0xd8] sm:$0xff] }
  0x53   : > { %v2213_v63 = vld [vmem:[%s2990_s29 + $0x119] sm:$0xff]  ;;  %v574_v2 = vpack.c.bf16 %v568_v60, %v567_v59  ;;  %v2214_v5 = vld [vmem:[%s2990_s29 + $0x121] sm:$0xff]  ;;  %v798_v8 = vld [vmem:[%s2990_s29 + $0x9] sm:$0xff]  ;;  %v575_v10 = vpack.c.bf16 %v569_v4, %v569_v4 }
  0x54   : > { %v1195_v3 = vpack.c.bf16 %v2213_v63, %v2212_v61  ;;  %v797_v7 = vld [vmem:[%s2990_s29 + $0x1] sm:$0xff]  ;;  %v1308_v9 = vld [vmem:[%s2990_s29 + $0x11] sm:$0xff]  ;;  %v1196_v11 = vpack.c.bf16 %v2214_v5, %v2214_v5  ;;  %v800_v15 = vld [vmem:[%s2990_s29 + $0x19] sm:$0xff] }
  0x55   : > { %v808_v12 = vpack.c.bf16 %v798_v8, %v797_v7  ;;  %v1318_v13 = vpack.c.bf16 %v1308_v9, %v798_v8  ;;  %v1310_v16 = vld [vmem:[%s2990_s29 + $0x21] sm:$0xff]  ;;  %v802_v17 = vld [vmem:[%s2990_s29 + $0x29] sm:$0xff]  ;;  %v809_v18 = vpack.c.bf16 %v800_v15, %v1308_v9  ;;  %v1312_v19 = vld [vmem:[%s2990_s29 + $0x31] sm:$0xff] }
  0x56   : > { %v1319_v20 = vpack.c.bf16 %v1310_v16, %v800_v15  ;;  %v810_v22 = vpack.c.bf16 %v802_v17, %v1310_v16  ;;  %v1320_v25 = vpack.c.bf16 %v1312_v19, %v802_v17  ;;  %v2247_v27 = vld [vmem:[%s3457_s1 + $0x10] sm:$0x3]  ;;  %v804_v28 = vld [vmem:[%s2990_s29 + $0x39] sm:$0xff]  ;;  %v1314_v30 = vld [vmem:[%s2990_s29 + $0x41] sm:$0xff] }
  0x57   : > { %2353 = vmatmul.mubr.msk.bf16.gmra.mrb[8].mxu1 %vm597_vm2, %v594_v35  ;;  %v1782_v29 = vld [vmem:[%s3458_s2] sm:$0x3]  ;;  %v806_v31 = vld [vmem:[%s2990_s29 + $0x49] sm:$0xff]  ;;  %v1316_v32 = vld [vmem:[%s2990_s29 + $0x51] sm:$0xff]  ;;  %v811_v33 = vpack.c.bf16 %v804_v28, %v1312_v19  ;;  %v1321_v34 = vpack.c.bf16 %v1314_v30, %v804_v28  ;;  %v1599_v59 = vsel %vm616_vm1, %v2247_v27, 0 }
  0x58   : > { %2409 = vmatmul.mubr.msk.bf16.gmra.mrb[8].mxu0 %vm597_vm2, %v3072_v36  ;;  %2358 = vmatprep.mubr.msk.bf16.mxu1 %vm597_vm2, %v570_v37  ;;  %v812_v35 = vpack.c.bf16 %v806_v31, %v1314_v30  ;;  %v1322_v37 = vpack.c.bf16 %v1316_v32, %v806_v31  ;;  %v2168_v39 = vld [vmem:[%s2990_s29 + $0xd0] sm:$0xff]  ;;  %v2230_v42 = vld [vmem:[%s2990_s29 + $0x79] sm:$0xff]  ;;  %v813_v43 = vpack.c.bf16 %v1316_v32, %v1316_v32  ;;  %v2175_v63 = vld [vmem:[%s2990_s29 + $0x108] sm:$0xff] }
  0x59   : > { %2414 = vmatprep.mubr.msk.bf16.mxu0 %vm597_vm2, %v1191_v38  ;;  %v1317_v38 = vld [vmem:[%s2990_s29 + $0x59] sm:$0xff]  ;;  %v2229_v41 = vld [vmem:[%s2990_s29 + $0x71] sm:$0xff] }
  0x5a   : > { %v1323_v44 = vpack.c.bf16 %v1317_v38, %v1317_v38  ;;  %v1445_v46 = vpack.c.bf16 %v2230_v42, %v2229_v41  ;;  %v2170_v47 = vld [vmem:[%s2990_s29 + $0xe0] sm:$0xff]  ;;  %v2237_v4 = vld [vmem:[%s2990_s29 + $0xb1] sm:$0xff] }
  0x5b   : > { %v2234_v55 = vld [vmem:[%s2990_s29 + $0x99] sm:$0xff]  ;;  %v1569_v28 = vld [vmem:[%s2990_s29 + $0x4a] sm:$0xff] }
  0x5c   : > { %v2174_v61 = vld [vmem:[%s2990_s29 + $0x100] sm:$0xff]  ;;  %v1562_v15 = vld [vmem:[%s2990_s29 + $0x12] sm:$0xff] }
  0x5d   : > { %v2238_v5 = vld [vmem:[%s2990_s29 + $0xb9] sm:$0xff]  ;;  %v939_v7 = vpack.c.bf16 %v2175_v63, %v2174_v61 }
  0x5e   : > { %v1563_v19 = vld [vmem:[%s2990_s29 + $0x1a] sm:$0xff] }
  0x5f   : > { %2359 = vmatmul.mubr.msk.bf16.vlgmr.msra.gmra.mrb[0].mxu1 %vm597_vm2, %v571_v45  ;;  %v936_v45 = vpack.c.bf16 %v2169_v40, %v2168_v39 }
  0x60   : > { %2415 = vmatmul.mubr.msk.bf16.vlgmr.msra.gmra.mrb[0].mxu0 %vm597_vm2, %v1192_v48  ;;  %2371 = vmatpush3.bf16.msra.mxu1 %v835_v49  ;;  %v2171_v48 = vld [vmem:[%s2990_s29 + $0xe8] sm:$0xff] }
  0x61   : > { %2427 = vmatpush3.bf16.msra.mxu0 %v1345_v51  ;;  %2362 = vmatprep.mubr.msk.bf16.mxu1 %vm597_vm2, %v572_v50  ;;  %v2231_v49 = vld [vmem:[%s2990_s29 + $0x81] sm:$0xff]  ;;  %v2232_v50 = vld [vmem:[%s2990_s29 + $0x89] sm:$0xff]  ;;  %v937_v53 = vpack.c.bf16 %v2171_v48, %v2170_v47 }
  0x62   : > { %2418 = vmatprep.mubr.msk.bf16.mxu0 %vm597_vm2, %v1193_v52  ;;  %2582 = vmatprep.subr.msk.bf16.mxu0 %vm616_vm1, %v2240_v54  ;;  %v2172_v51 = vld [vmem:[%s2990_s29 + $0xf0] sm:$0xff]  ;;  %v2173_v52 = vld [vmem:[%s2990_s29 + $0xf8] sm:$0xff]  ;;  %v1446_v56 = vpack.c.bf16 %v2232_v50, %v2231_v49 }
  0x63   : > { %2578 = vmatprep.subr.msk.bf16.mxu1 %vm616_vm1, %v2179_v57  ;;  %v2233_v54 = vld [vmem:[%s2990_s29 + $0x91] sm:$0xff]  ;;  %v1784_v57 = vsel %vm616_vm1, %v1782_v29, 0  ;;  %v938_v58 = vpack.c.bf16 %v2173_v52, %v2172_v51 }
  0x64   : > { %v1447_v60 = vpack.c.bf16 %v2234_v55, %v2233_v54 }
  0x67   : > { %2363 = vmatmul.mubr.msk.bf16.gmra.mrb[4].mxu1 %vm597_vm2, %v573_v0  ;;  %v2235_v0 = vld [vmem:[%s2990_s29 + $0xa1] sm:$0xff] }
  0x68   : > { %2419 = vmatmul.mubr.msk.bf16.gmra.mrb[4].mxu0 %vm597_vm2, %v1194_v1  ;;  %2366 = vmatprep.mubr.msk.bf16.mxu1 %vm597_vm2, %v574_v2  ;;  %v2236_v1 = vld [vmem:[%s2990_s29 + $0xa9] sm:$0xff] }
  0x69   : > { %2422 = vmatprep.mubr.msk.bf16.mxu0 %vm597_vm2, %v1195_v3  ;;  %v2176_v2 = vld [vmem:[%s2990_s29 + $0x110] sm:$0xff]  ;;  %v2177_v3 = vld [vmem:[%s2990_s29 + $0x118] sm:$0xff]  ;;  %v1448_v8 = vpack.c.bf16 %v2236_v1, %v2235_v0 }
  0x6a   : > { %v940_v9 = vpack.c.bf16 %v2177_v3, %v2176_v2 }
  0x6f   : > { %2367 = vmatmul.mubr.msk.bf16.gmra.mrb[8].mxu1 %vm597_vm2, %v575_v10  ;;  %v1449_v10 = vpack.c.bf16 %v2238_v5, %v2237_v4 }
  0x70   : > { %2423 = vmatmul.mubr.msk.bf16.gmra.mrb[8].mxu0 %vm597_vm2, %v1196_v11  ;;  %2372 = vmatprep.mubr.msk.bf16.mxu1 %vm597_vm2, %v808_v12  ;;  %v2178_v11 = vld [vmem:[%s2990_s29 + $0x120] sm:$0xff] }
  0x71   : > { %2428 = vmatprep.mubr.msk.bf16.mxu0 %vm597_vm2, %v1318_v13  ;;  %v2239_v12 = vld [vmem:[%s2990_s29 + $0xc1] sm:$0xff]  ;;  %v1561_v13 = vld [vmem:[%s2990_s29 + $0xa] sm:$0xff]  ;;  %v941_v16 = vpack.c.bf16 %v2178_v11, %v2178_v11 }
  0x72   : > { %v1450_v17 = vpack.c.bf16 %v2239_v12, %v2239_v12 }
  0x77   : > { %2373 = vmatmul.mubr.msk.bf16.vlgmr.msra.gmra.mrb[0].mxu1 %vm597_vm2, %v809_v18  ;;  %v1572_v18 = vpack.c.bf16 %v1562_v15, %v1561_v13 }
  0x78   : > { %2429 = vmatmul.mubr.msk.bf16.vlgmr.msra.gmra.mrb[0].mxu0 %vm597_vm2, %v1319_v20  ;;  %2385 = vmatpush3.bf16.msra.mxu1 %v963_v21  ;;  %v1564_v20 = vld [vmem:[%s2990_s29 + $0x22] sm:$0xff]  ;;  %v1565_v21 = vld [vmem:[%s2990_s29 + $0x2a] sm:$0xff] }
  0x79   : > { %2441 = vmatpush3.bf16.msra.mxu0 %v1472_v23  ;;  %2376 = vmatprep.mubr.msk.bf16.mxu1 %vm597_vm2, %v810_v22  ;;  %v1566_v22 = vld [vmem:[%s2990_s29 + $0x32] sm:$0xff]  ;;  %v1573_v23 = vpack.c.bf16 %v1564_v20, %v1563_v19 }
  0x7a   : > { %2432 = vmatprep.mubr.msk.bf16.mxu0 %vm597_vm2, %v1320_v25  ;;  %2583 = vmatprep.subr.msk.bf16.mxu0 %vm616_vm1, %v2247_v27  ;;  %v1574_v25 = vpack.c.bf16 %v1566_v22, %v1565_v21  ;;  %v1568_v27 = vld [vmem:[%s2990_s29 + $0x42] sm:$0xff] }
  0x7b   : > { %2584 = vmatprep.subr.msk.bf16.mxu1 %vm616_vm1, %v1782_v29  ;;  %v1570_v29 = vld [vmem:[%s2990_s29 + $0x52] sm:$0xff]  ;;  %vm1716_vm1 = vcmask 63488  }
  0x7c   : > { %v1576_v31 = vpack.c.bf16 %v1570_v29, %v1569_v28 }
  0x7f   : > { %2377 = vmatmul.mubr.msk.bf16.gmra.mrb[4].mxu1 %vm597_vm2, %v811_v33 }
  0x80   : > { %2433 = vmatmul.mubr.msk.bf16.gmra.mrb[4].mxu0 %vm597_vm2, %v1321_v34  ;;  %2380 = vmatprep.mubr.msk.bf16.mxu1 %vm597_vm2, %v812_v35 }
  0x81   : > { %2436 = vmatprep.mubr.msk.bf16.mxu0 %vm597_vm2, %v1322_v37 }
  0x87   : > { %2381 = vmatmul.mubr.msk.bf16.gmra.mrb[8].mxu1 %vm597_vm2, %v813_v43 }
  0x88   : > { %2437 = vmatmul.mubr.msk.bf16.gmra.mrb[8].mxu0 %vm597_vm2, %v1323_v44  ;;  %2386 = vmatprep.mubr.msk.bf16.mxu1 %vm597_vm2, %v936_v45 }
  0x89   : > { %2442 = vmatprep.mubr.msk.bf16.mxu0 %vm597_vm2, %v1445_v46 }
  0x8f   : > { %2387 = vmatmul.mubr.msk.bf16.vlgmr.msra.gmra.mrb[0].mxu1 %vm597_vm2, %v937_v53 }
  0x90   : > { %2443 = vmatmul.mubr.msk.bf16.vlgmr.msra.gmra.mrb[0].mxu0 %vm597_vm2, %v1446_v56  ;;  %2469 = vmatpush3.bf16.msra.mxu1 %v1784_v57 }
  0x91   : > { %2455 = vmatpush3.bf16.msra.mxu0 %v1599_v59  ;;  %2390 = vmatprep.mubr.msk.bf16.mxu1 %vm597_vm2, %v938_v58 }
  0x92   : > { %2446 = vmatprep.mubr.msk.bf16.mxu0 %vm597_vm2, %v1447_v60 }
  0x97   : > { %2391 = vmatmul.mubr.msk.bf16.gmra.mrb[4].mxu1 %vm597_vm2, %v939_v7 }
  0x98   : > { %2447 = vmatmul.mubr.msk.bf16.gmra.mrb[4].mxu0 %vm597_vm2, %v1448_v8  ;;  %2394 = vmatprep.mubr.msk.bf16.mxu1 %vm597_vm2, %v940_v9 }
  0x99   : > { %2450 = vmatprep.mubr.msk.bf16.mxu0 %vm597_vm2, %v1449_v10 }
  0x9f   : > { %2395 = vmatmul.mubr.msk.bf16.gmra.mrb[8].mxu1 %vm597_vm2, %v941_v16 }
  0xa0   : > { %2451 = vmatmul.mubr.msk.bf16.gmra.mrb[8].mxu0 %vm597_vm2, %v1450_v17  ;;  %2470 = vmatprep.mubr.msk.bf16.mxu1 %vm597_vm2, %v3007_v62  ;;  %v1567_v62 = vld [vmem:[%s2990_s29 + $0x3a] sm:$0xff] }
  0xa1   : > { %2456 = vmatprep.mubr.msk.bf16.mxu0 %vm597_vm2, %v1572_v18  ;;  %v1575_v30 = vpack.c.bf16 %v1568_v27, %v1567_v62 }
  0xa7   : > { %2471 = vmatmul.mubr.msk.bf16.vlgmr.msra.gmra.mrb[12].mxu1 %vm597_vm2, %v3022_v6  ;;  %v1571_v6 = vld [vmem:[%s2990_s29 + $0x5a] sm:$0xff]  ;;  %s2783_s29 = smov [#allocation5]  }
  0xa8   : > { %2457 = vmatmul.mubr.msk.bf16.vlgmr.msra.gmra.mrb[0].mxu0 %vm597_vm2, %v1573_v23  ;;  %2474 = vmatprep.mubr.msk.bf16.mxu1 %vm597_vm2, %v3035_v14  ;;  %v1577_v14 = vpack.c.bf16 %v1571_v6, %v1571_v6  ;;  %s1977_s18 = sshll.u32 %s2783_s29, 4  ;;  %s3335_s18 = int_to_ptr.vmem [resolvable:$true] %s1977_s18 }
  0xa9   : > { %2460 = vmatprep.mubr.msk.bf16.mxu0 %vm597_vm2, %v1574_v25 }
  0xaf   : > { %2475 = vmatmul.mubr.msk.bf16.gmra.mrb[16].mxu1 %vm597_vm2, %v3048_v24 }
  0xb0   : > { %2461 = vmatmul.mubr.msk.bf16.gmra.mrb[4].mxu0 %vm597_vm2, %v1575_v30  ;;  %2478 = vmatprep.mubr.msk.bf16.mxu1 %vm597_vm2, %v3050_v26 }
  0xb1   : > { %2464 = vmatprep.mubr.msk.bf16.mxu0 %vm597_vm2, %v1576_v31 }
  0xb7   : > { %2479 = vmatmul.mubr.msk.bf16.gmra.mrb[20].mxu1 %vm597_vm2, %v3072_v36 }
  0xb8   : > { %2465 = vmatmul.mubr.msk.bf16.gmra.mrb[8].mxu0 %vm597_vm2, %v1577_v14 }
 0x162   : > { %v2388_v32 = vpop.f32.mrb[0].mxu1 }
 0x163   : > { %v999_v33 = vpop.f32.mrb[1].mxu1 }
 0x164   : > { %v2389_v34 = vpop.f32.mrb[2].mxu1 }
 0x165   : > { %v1002_v35 = vpop.f32.mrb[3].mxu1 }
 0x16a   : > { %v2392_v24 = vpop.f32.mrb[4].mxu1 }
 0x16b   : > { %v1015_v37 = vpop.f32.mrb[5].mxu1 }
 0x16c   : > { %v3216_v38 = vpop.f32.mrb[6].mxu1 }
 0x16d   : > { %v3218_v26 = vpop.f32.mrb[7].mxu1 }
 0x172   : > { %v2396_v39 = vpop.f32.mrb[8].mxu1 }
 0x173   : > { %v3220_v40 = vpop.f32.mrb[9].mxu1 }
 0x174   : > { %v2397_v41 = vpop.f32.mrb[10].mxu1 }
 0x175   : > { %v1034_v36 = vpop.f32.mrb[11].mxu1 }
 0x17a   : > { %v2472_v42 = vpop.f32.mrb[12].mxu1 }
 0x17b   : > { %v2458_v43 = vpop.f32.mrb[0].mxu0  ;;  %1866 = vst.msk [vmem:[%s2988_s13 + $0xf] sm:$0x1] %vm1692_vm3, %v2472_v42  ;;  %v1820_v44 = vpop.f32.mrb[13].mxu1 }
 0x17c   : > { %1867 = vst.msk [vmem:[%s2988_s13 + $0xe] sm:$0xfc] %vm1694_vm4, %v2472_v42  ;;  %v2482_v45 = vadd.f32 %v2458_v43, %v2388_v32  ;;  %v1635_v46 = vpop.f32.mrb[1].mxu0  ;;  %v2473_v47 = vpop.f32.mrb[14].mxu1 }
 0x17d   : > { %1864 = vst.msk [vmem:[%s2988_s13] sm:$0xff] %vm1688_vm5, %v1820_v44  ;;  %v2483_v48 = vadd.f32 %v1635_v46, %v999_v33  ;;  %v2459_v49 = vpop.f32.mrb[2].mxu0  ;;  %v1823_v50 = vpop.f32.mrb[15].mxu1 }
 0x17e   : > { %1868 = vst.msk [vmem:[%s2988_s13 + $0x16] sm:$0x3] %vm1696_vm6, %v2473_v47  ;;  %v2484_v51 = vadd.f32 %v2459_v49, %v2389_v34  ;;  %v1638_v52 = vpop.f32.mrb[3].mxu0 }
 0x17f   : > { %1869 = vst.msk [vmem:[%s2988_s13 + $0x15] sm:$0xf8] %vm1698_vm7, %v2473_v47  ;;  %v2485_v53 = vadd.f32 %v1638_v52, %v1002_v35 }
 0x180   : > { %1693 = vst.msk [vmem:[%s2983_s26 + $0xf] sm:$0x1] %vm1692_vm3, %v2482_v45 }
 0x181   : > { %1695 = vst.msk [vmem:[%s2983_s26 + $0xe] sm:$0xfc] %vm1694_vm4, %v2482_v45 }
 0x182   : > { %1865 = vst.msk [vmem:[%s2988_s13 + $0x7] sm:$0xfe] %vm1690_vm8, %v1823_v50  ;;  %1691 = vst.msk [vmem:[%s2983_s26 + $0x7] sm:$0xfe] %vm1690_vm8, %v2485_v53  ;;  %v2476_v54 = vpop.f32.mrb[16].mxu1 }
 0x183   : > { %1689 = vst.msk [vmem:[%s2983_s26] sm:$0xff] %vm1688_vm5, %v2483_v48  ;;  %v2462_v55 = vpop.f32.mrb[4].mxu0  ;;  %v1836_v56 = vpop.f32.mrb[17].mxu1 }
 0x184   : > { %1697 = vst.msk [vmem:[%s2983_s26 + $0x16] sm:$0x3] %vm1696_vm6, %v2484_v51  ;;  %v1879_v57 = vld [vmem:[%s2988_s13] sm:$0xff]  ;;  %v2486_v58 = vadd.f32 %v2462_v55, %v2392_v24  ;;  %v1651_v59 = vpop.f32.mrb[5].mxu0  ;;  %v2477_v60 = vpop.f32.mrb[18].mxu1 }
 0x185   : > { %1699 = vst.msk [vmem:[%s2983_s26 + $0x15] sm:$0xf8] %vm1698_vm7, %v2484_v51  ;;  %v1888_v61 = vsel %vm1688_vm5, %v1879_v57, 0.0  ;;  %v2487_v63 = vadd.f32 %v1651_v59, %v1015_v37  ;;  %v2463_v0 = vpop.f32.mrb[6].mxu0  ;;  %v1839_v1 = vpop.f32.mrb[19].mxu1  ;;  %v1881_v3 = vld [vmem:[%s2988_s13 + $0x10] sm:$0xff]  ;;  %v1912_v9 = vmul.f32 %v1879_v57, %v1879_v57 }
 0x186   : > { %1874 = vst.msk [vmem:[%s2988_s13 + $0x2b] sm:$0x1f] %vm1708_vm9, %v2476_v54  ;;  %1709 = vst.msk [vmem:[%s2983_s26 + $0x2b] sm:$0x1f] %vm1708_vm9, %v2486_v58  ;;  %v2488_v4 = vadd.f32 %v2463_v0, %v3216_v38  ;;  %v1654_v5 = vpop.f32.mrb[7].mxu0  ;;  %v1914_v18 = vmul.f32 %v1881_v3, %v1881_v3  ;;  %v1891_v25 = vsel %vm1688_vm5, %v1881_v3, 0.0 }
 0x187   : > { %1875 = vst.msk [vmem:[%s2988_s13 + $0x2a] sm:$0xc0] %vm1710_vm10, %v2476_v54  ;;  %1711 = vst.msk [vmem:[%s2983_s26 + $0x2a] sm:$0xc0] %vm1710_vm10, %v2486_v58  ;;  %v2489_v11 = vadd.f32 %v1654_v5, %v3218_v26  ;;  %v1920_v62 = vsel %vm1688_vm5, %v1912_v9, 0.0 }
 0x188   : > { %1870 = vst.msk [vmem:[%s2988_s13 + $0x1d] sm:$0x7] %vm1700_vm11, %v1836_v56  ;;  %1701 = vst.msk [vmem:[%s2983_s26 + $0x1d] sm:$0x7] %vm1700_vm11, %v2487_v63  ;;  %v1923_v26 = vsel %vm1688_vm5, %v1914_v18, 0.0 }
 0x189   : > { %1871 = vst.msk [vmem:[%s2988_s13 + $0x1c] sm:$0xf0] %vm1702_vm12, %v1836_v56  ;;  %v1880_v2 = vld [vmem:[%s2988_s13 + $0x8] sm:$0xff]  ;;  %1703 = vst.msk [vmem:[%s2983_s26 + $0x1c] sm:$0xf0] %vm1702_vm12, %v2487_v63 }
 0x18a   : > { %1876 = vst.msk [vmem:[%s2988_s13 + $0x32] sm:$0x3f] %vm1712_vm13, %v2477_v60  ;;  %v1718_v7 = vld [vmem:[%s2983_s26] sm:$0xff]  ;;  %v1889_v8 = vsel %vm1688_vm5, %v1880_v2, 0.0  ;;  %v1913_v10 = vmul.f32 %v1880_v2, %v1880_v2  ;;  %1713 = vst.msk [vmem:[%s2983_s26 + $0x32] sm:$0x3f] %vm1712_vm13, %v2488_v4 }
 0x18b   : > { %1877 = vst.msk [vmem:[%s2988_s13 + $0x31] sm:$0x80] %vm1714_vm14, %v2477_v60  ;;  %v1720_v12 = vld [vmem:[%s2983_s26 + $0x10] sm:$0xff]  ;;  %v1751_v13 = vmul.f32 %v1718_v7, %v1718_v7  ;;  %v1890_v15 = vadd.f32 %v1889_v8, %v1888_v61  ;;  %1715 = vst.msk [vmem:[%s2983_s26 + $0x31] sm:$0x80] %vm1714_vm14, %v2488_v4  ;;  %v1719_v16 = vld [vmem:[%s2983_s26 + $0x8] sm:$0xff] }
 0x18c   : > { %1872 = vst.msk [vmem:[%s2988_s13 + $0x24] sm:$0xf] %vm1704_vm15, %v1839_v1  ;;  %v1753_v17 = vmul.f32 %v1720_v12, %v1720_v12  ;;  %1705 = vst.msk [vmem:[%s2983_s26 + $0x24] sm:$0xf] %vm1704_vm15, %v2489_v11  ;;  %v1752_v19 = vmul.f32 %v1719_v16, %v1719_v16  ;;  %v1727_v20 = vsel %vm1688_vm5, %v1718_v7, 0.0  ;;  %v1728_v21 = vsel %vm1688_vm5, %v1719_v16, 0.0 }
 0x18d   : > { %1873 = vst.msk [vmem:[%s2988_s13 + $0x23] sm:$0xe0] %vm1706_vm0, %v1839_v1  ;;  %1707 = vst.msk [vmem:[%s2983_s26 + $0x23] sm:$0xe0] %vm1706_vm0, %v2489_v11  ;;  %v2480_v22 = vpop.f32.mrb[20].mxu1  ;;  %v1729_v23 = vadd.f32 %v1728_v21, %v1727_v20  ;;  %v1921_v27 = vsel %vm1688_vm5, %v1913_v10, 0.0  ;;  %v1892_v32 = vadd.f32 %v1891_v25, %v1890_v15 }
 0x18e   : > { %v2466_v28 = vpop.f32.mrb[8].mxu0  ;;  %v1852_v29 = vpop.f32.mrb[21].mxu1  ;;  %v1759_v30 = vsel %vm1688_vm5, %v1751_v13, 0.0  ;;  %v1760_v31 = vsel %vm1688_vm5, %v1752_v19, 0.0  ;;  %v1730_v6 = vsel %vm1688_vm5, %v1720_v12, 0.0  ;;  %v1762_v24 = vsel %vm1688_vm5, %v1753_v17, 0.0 }
 0x18f   : > { %v1882_v14 = vld [vmem:[%s2988_s13 + $0x18] sm:$0xff]  ;;  %v1667_v33 = vpop.f32.mrb[9].mxu0  ;;  %1878 = vst.msk [vmem:[%s2988_s13 + $0x39] sm:$0x7f] %vm1716_vm1, %v1852_v29  ;;  %v2481_v34 = vpop.f32.mrb[22].mxu1  ;;  %v1761_v35 = vadd.f32 %v1760_v31, %v1759_v30  ;;  %v1731_v42 = vadd.f32 %v1730_v6, %v1729_v23  ;;  %v1922_v46 = vadd.f32 %v1921_v27, %v1920_v62 }
 0x190   : > { %v1893_v38 = vsel %vm1688_vm5, %v1882_v14, 0.0  ;;  %v2490_v39 = vadd.f32 %v1667_v33, %v3220_v40  ;;  %v2467_v41 = vpop.f32.mrb[10].mxu0  ;;  %v1855_v36 = vpop.f32.mrb[23].mxu1  ;;  %v1721_v48 = vld [vmem:[%s2983_s26 + $0x18] sm:$0xff]  ;;  %v1915_v51 = vmul.f32 %v1882_v14, %v1882_v14 }
 0x191   : > { %v1885_v37 = vld [vmem:[%s2988_s13 + $0x30] sm:$0xff]  ;;  %v1894_v45 = vadd.f32 %v1893_v38, %v1892_v32  ;;  %v1670_v47 = vpop.f32.mrb[11].mxu0  ;;  %v1754_v53 = vmul.f32 %v1721_v48, %v1721_v48  ;;  %v1763_v54 = vadd.f32 %v1762_v24, %v1761_v35  ;;  %v1732_v55 = vsel %vm1688_vm5, %v1721_v48, 0.0 }
 0x192   : > { %v1899_v50 = vsel %vm1688_vm5, %v1885_v37, 0.0  ;;  %v1918_v52 = vmul.f32 %v1885_v37, %v1885_v37  ;;  %1717 = vst.msk [vmem:[%s2983_s26 + $0x39] sm:$0x7f] %vm1716_vm1, %v2490_v39  ;;  %v1724_v40 = vld [vmem:[%s2983_s26 + $0x30] sm:$0xff]  ;;  %v1733_v59 = vadd.f32 %v1732_v55, %v1731_v42  ;;  %v1924_v8 = vadd.f32 %v1923_v26, %v1922_v46 }
 0x193   : > { %v1883_v43 = vld [vmem:[%s2988_s13 + $0x20] sm:$0xff]  ;;  %v1764_v2 = vsel %vm1688_vm5, %v1754_v53, 0.0  ;;  %v1757_v4 = vmul.f32 %v1724_v40, %v1724_v40  ;;  %v1925_v13 = vsel %vm1688_vm5, %v1915_v51, 0.0  ;;  %v1738_v17 = vsel %vm1688_vm5, %v1724_v40, 0.0 }
 0x194   : > { %v1884_v44 = vld [vmem:[%s2988_s13 + $0x28] sm:$0xff]  ;;  %v1895_v49 = vsel %vm1688_vm5, %v1883_v43, 0.0  ;;  %v1722_v57 = vld [vmem:[%s2983_s26 + $0x20] sm:$0xff]  ;;  %v1916_v61 = vmul.f32 %v1883_v43, %v1883_v43  ;;  %v1765_v5 = vadd.f32 %v1764_v2, %v1763_v54  ;;  %v1926_v21 = vadd.f32 %v1925_v13, %v1924_v8 }
 0x195   : > { %v1896_v56 = vadd.f32 %v1895_v49, %v1894_v45  ;;  %v1723_v58 = vld [vmem:[%s2983_s26 + $0x28] sm:$0xff]  ;;  %v1897_v60 = vsel %vm1688_vm5, %v1884_v44, 0.0  ;;  %v1917_v63 = vmul.f32 %v1884_v44, %v1884_v44  ;;  %v1755_v0 = vmul.f32 %v1722_v57, %v1722_v57 }
 0x196   : > { %v1756_v1 = vmul.f32 %v1723_v58, %v1723_v58  ;;  %v1734_v3 = vsel %vm1688_vm5, %v1722_v57, 0.0  ;;  %v1736_v10 = vsel %vm1688_vm5, %v1723_v58, 0.0  ;;  %v1886_v11 = vld [vmem:[%s2988_s13 + $0x38] sm:$0xff]  ;;  %v1927_v22 = vsel %vm1688_vm5, %v1916_v61, 0.0  ;;  %v1750_v61 = vld [vmem:[#allocation5] sm:$0x1] }
 0x197   : > { %v1735_v7 = vadd.f32 %v1734_v3, %v1733_v59  ;;  %v1766_v9 = vsel %vm1688_vm5, %v1755_v0, 0.0  ;;  %v1898_v12 = vadd.f32 %v1897_v60, %v1896_v56  ;;  %v1901_v18 = vsel %vm1688_vm5, %v1886_v11, 0.0  ;;  %v1726_v56 = vld [vmem:[#allocation3] sm:$0x1] }
 0x198   : > { %v1767_v15 = vadd.f32 %v1766_v9, %v1765_v5  ;;  %v1768_v19 = vsel %vm1688_vm5, %v1756_v1, 0.0  ;;  %v1770_v62 = vsel %vm1688_vm5, %v1757_v4, 0.0  ;;  %v1919_v28 = vmul.f32 %v1886_v11, %v1886_v11  ;;  %v1911_v5 = vld [vmem:[#allocation8] sm:$0x1] }
 0x199   : > { %v1737_v16 = vadd.f32 %v1736_v10, %v1735_v7  ;;  %v1900_v20 = vadd.f32 %v1899_v50, %v1898_v12  ;;  %v1725_v23 = vld [vmem:[%s2983_s26 + $0x38] sm:$0xff]  ;;  %v1928_v6 = vadd.f32 %v1927_v22, %v1926_v21  ;;  %v1929_v33 = vsel %vm1688_vm5, %v1917_v63, 0.0  ;;  %s2782_s26 = smov [#allocation3]  }
 0x19a   : > { %v1769_v25 = vadd.f32 %v1768_v19, %v1767_v15  ;;  %v1758_v29 = vmul.f32 %v1725_v23, %v1725_v23  ;;  %v1740_v30 = vsel %vm1688_vm5, %v1725_v23, 0.0  ;;  %v1931_v26 = vsel %vm1688_vm5, %v1918_v52, 0.0  ;;  %v1887_v52 = vld [vmem:[#allocation7] sm:$0x1]  ;;  %s1966_s13 = sshll.u32 %s2782_s26, 4  ;;  %s1967_s13 = int_to_ptr.vmem [resolvable:$true] %s1966_s13 }
 0x19b   : > { %v1739_v27 = vadd.f32 %v1738_v17, %v1737_v16  ;;  %v1902_v31 = vadd.f32 %v1901_v18, %v1900_v20  ;;  %v1930_v24 = vadd.f32 %v1929_v33, %v1928_v6  ;;  %v1933_v39 = vsel %vm1688_vm5, %v1919_v28, 0.0  ;;  %s2641_s23 = scalar_lea.vmem %s1967_s13, 16  ;;  %s2647_s24 = scalar_lea.vmem %s1967_s13, 32 }
 0x19c   : > { %v1771_v14 = vadd.f32 %v1770_v62, %v1769_v25  ;;  %v1772_v34 = vsel %vm1688_vm5, %v1758_v29, 0.0  ;;  %p2642_p11 = scmp.ne.s32.totalorder %s1967_s13, %s2641_s23  ;;  %p2648_p0 = scmp.lt.s32.totalorder %s1967_s13, %s1967_s13 }
 0x19d   : > { %v1741_v32 = vadd.f32 %v1740_v30, %v1739_v27  ;;  %v1903_v35 = vrot.slane %v1902_v31, 4  ;;  %v1932_v36 = vadd.f32 %v1931_v26, %v1930_v24  ;;  %p2649_p1 = scmp.lt.s32.totalorder %s2647_s24, %s2641_s23 }
 0x19e   : > { %v1773_v37 = vadd.f32 %v1772_v34, %v1771_v14  ;;  %p2643_p12 = pnand %p2642_p11, %p2604_p10 }
 0x19f   : > { %v1742_v38 = vrot.slane %v1741_v32, 4  ;;  %v1904_v41 = vadd.f32 %v1903_v35, %v1902_v31  ;;  %v1934_v45 = vadd.f32 %v1933_v39, %v1932_v36  ;;  %p2650_p2 = por %p2649_p1, %p2648_p0 }
 0x1a0   : > { %v1774_v42 = vrot.slane %v1773_v37, 4  ;;  %p2644_p13 = pneg %p2643_p12 }
 0x1a1   : > { %v1743_v43 = vadd.f32 %v1742_v38, %v1741_v32  ;;  %v1905_v44 = vrot.slane %v1904_v41, 2  ;;  %v1935_v49 = vrot.slane %v1934_v45, 4 }
 0x1a2   : > { %v1775_v46 = vadd.f32 %v1774_v42, %v1773_v37  ;;  %p2651_p3 = pnand %p2650_p2, %p2644_p13 }
 0x1a3   : > { %v1744_v47 = vrot.slane %v1743_v43, 2  ;;  %v1906_v48 = vadd.f32 %v1905_v44, %v1904_v41  ;;  %v1936_v53 = vadd.f32 %v1935_v49, %v1934_v45 }
 0x1a4   : > { %v1776_v50 = vrot.slane %v1775_v46, 2 }
 0x1a5   : > { %v1745_v51 = vadd.f32 %v1744_v47, %v1743_v43  ;;  %v1907_v40 = vrot.slane %v1906_v48, 1  ;;  %v1937_v58 = vrot.slane %v1936_v53, 2 }
 0x1a6   : > { %v1777_v54 = vadd.f32 %v1776_v50, %v1775_v46 }
 0x1a7   : > { %v1746_v55 = vrot.slane %v1745_v51, 1  ;;  %v1908_v57 = vadd.f32 %v1907_v40, %v1906_v48  ;;  %v1938_v0 = vadd.f32 %v1937_v58, %v1936_v53 }
 0x1a8   : > { %v1778_v59 = vrot.slane %v1777_v54, 1 }
 0x1a9   : > { %v1747_v60 = vadd.f32 %v1746_v55, %v1745_v51  ;;  %v1909_v63 = vadd.f32 %v1908_v57, %v1887_v52  ;;  %v1939_v3 = vrot.slane %v1938_v0, 1 }
 0x1aa   : > { %v1779_v1 = vadd.f32 %v1778_v59, %v1777_v54 }
 0x1ab   : > { %v1748_v2 = vadd.f32 %v1747_v60, %v1726_v56  ;;  %1910 = vst.msk [vmem:[#allocation7] sm:$0x1] %vm1692_vm3, %v1909_v63 }
 0x1ac   : > { %v1780_v4 = vadd.f32 %v1779_v1, %v1750_v61 }
 0x1ad   : > { %1749 = vst.msk [vmem:[#allocation3] sm:$0x1] %vm1692_vm3, %v1748_v2 }
 0x1ae   : > { %2654 = shalt.err (!%p2651_p3)
}
 0x1af   : > { %s2655_s11 = scalar_lea.hbm %s3461_s5, 16 }
 0x1b0   : > { %p2656_p4 = scmp.ne.s32.totalorder %s3461_s5, %s2655_s11  ;;  %p2661_p7 = scmp.lt.u32.totalorder %s2655_s11, %s3461_s5 }
 0x1b2   : > { %p2657_p5 = pnand %p2656_p4, %p2604_p10 }
 0x1b4   : > { %p2658_p6 = pneg %p2657_p5 }
 0x1b6   : > { %p2663_p8 = pnand %p2661_p7, %p2658_p6 }
 0x1b8   : > { %2666 = shalt.err (!%p2663_p8)
}
 0x1b9   : > { %2589 = dma.vmem_to_hbm [thread:$0]  (%p2604_p10), %s1967_s13, 16, %s3461_s5, [#allocation4]   ;;  %v1940_v7 = vadd.f32 %v1939_v3, %v1938_v0  ;;  %1781 = vst.msk [vmem:[#allocation5] sm:$0x1] %vm1692_vm3, %v1780_v4 }
 0x1ba   : > { %s2667_s29 = scalar_lea.vmem %s3335_s18, 16  ;;  %s2673_s19 = scalar_lea.vmem %s3335_s18, 32 }
 0x1bb   : > { %p2668_p9 = scmp.ne.s32.totalorder %s3335_s18, %s2667_s29  ;;  %p2674_p13 = scmp.lt.s32.totalorder %s3335_s18, %s3335_s18 }
 0x1bc   : > { %p2675_p0 = scmp.lt.s32.totalorder %s2673_s19, %s2667_s29 }
 0x1bd   : > { %p2669_p11 = pnand %p2668_p9, %p2604_p10 }
 0x1be   : > { %p2676_p1 = por %p2675_p0, %p2674_p13 }
 0x1bf   : > { %p2670_p12 = pneg %p2669_p11 }
 0x1c1   : > { %p2677_p2 = pnand %p2676_p1, %p2670_p12 }
 0x1c3   : > { %2680 = shalt.err (!%p2677_p2)
}
 0x1c4   : > { %s2681_s13 = scalar_lea.hbm %s3462_s6, 16 }
 0x1c5   : > { %p2682_p3 = scmp.ne.s32.totalorder %s3462_s6, %s2681_s13  ;;  %p2687_p6 = scmp.lt.u32.totalorder %s2681_s13, %s3462_s6 }
 0x1c7   : > { %p2683_p4 = pnand %p2682_p3, %p2604_p10 }
 0x1c9   : > { %p2684_p5 = pneg %p2683_p4 }
 0x1cb   : > { %p2689_p7 = pnand %p2687_p6, %p2684_p5 }
 0x1cd   : > { %2692 = shalt.err (!%p2689_p7)
}
 0x1ce   : > { %2591 = dma.vmem_to_hbm [thread:$0]  (%p2604_p10), %s3335_s18, 16, %s3462_s6, [#allocation6]   ;;  %v1941_v8 = vadd.f32 %v1940_v7, %v1911_v5 }
 0x1cf   : > { %s2693_s15 = scalar_lea.vmem %s3338_s20, 16  ;;  %s2699_s16 = scalar_lea.vmem %s3338_s20, 32 }
 0x1d0   : > { %p2694_p8 = scmp.ne.s32.totalorder %s3338_s20, %s2693_s15  ;;  %p2700_p12 = scmp.lt.s32.totalorder %s3338_s20, %s3338_s20 }
 0x1d1   : > { %p2701_p13 = scmp.lt.s32.totalorder %s2699_s16, %s2693_s15 }
 0x1d2   : > { %p2695_p9 = pnand %p2694_p8, %p2604_p10 }
 0x1d3   : > { %p2702_p0 = por %p2701_p13, %p2700_p12 }
 0x1d4   : > { %p2696_p11 = pneg %p2695_p9 }
 0x1d6   : > { %p2703_p1 = pnand %p2702_p0, %p2696_p11 }
 0x1d8   : > { %2706 = shalt.err (!%p2703_p1)
}
 0x1d9   : > { %s2707_s29 = scalar_lea.hbm %s3463_s7, 16 }
 0x1da   : > { %p2708_p2 = scmp.ne.s32.totalorder %s3463_s7, %s2707_s29  ;;  %p2713_p5 = scmp.lt.u32.totalorder %s2707_s29, %s3463_s7 }
 0x1dc   : > { %p2709_p3 = pnand %p2708_p2, %p2604_p10 }
 0x1de   : > { %p2710_p4 = pneg %p2709_p3 }
 0x1e0   : > { %p2715_p6 = pnand %p2713_p5, %p2710_p4 }
 0x1e2   : > { %2718 = shalt.err (!%p2715_p6)
}
 0x1e3   : > { %2593 = dma.vmem_to_hbm [thread:$0]  (%p2604_p10), %s3338_s20, 16, %s3463_s7, [#allocation6]   ;;  %1942 = vst.msk [vmem:[#allocation8] sm:$0x1] %vm1692_vm3, %v1941_v8 }
 0x1e4   : > { %s2719_s25 = scalar_lea.vmem %s3359_s22, 16  ;;  %s2725_s10 = scalar_lea.vmem %s3359_s22, 32 }
 0x1e5   : > { %p2720_p7 = scmp.ne.s32.totalorder %s3359_s22, %s2719_s25  ;;  %p2726_p11 = scmp.lt.s32.totalorder %s3359_s22, %s3359_s22 }
 0x1e6   : > { %p2727_p12 = scmp.lt.s32.totalorder %s2725_s10, %s2719_s25 }
 0x1e7   : > { %p2721_p8 = pnand %p2720_p7, %p2604_p10 }
 0x1e8   : > { %p2728_p13 = por %p2727_p12, %p2726_p11 }
 0x1e9   : > { %p2722_p9 = pneg %p2721_p8 }
 0x1eb   : > { %p2729_p0 = pnand %p2728_p13, %p2722_p9 }
 0x1ed   : > { %2732 = shalt.err (!%p2729_p0)
}
 0x1ee   : > { %s2733_s14 = scalar_lea.hbm %s3464_s8, 16 }
 0x1ef   : > { %p2734_p1 = scmp.ne.s32.totalorder %s3464_s8, %s2733_s14  ;;  %p2739_p4 = scmp.lt.u32.totalorder %s2733_s14, %s3464_s8 }
 0x1f1   : > { %p2735_p2 = pnand %p2734_p1, %p2604_p10 }
 0x1f3   : > { %p2736_p3 = pneg %p2735_p2 }
 0x1f5   : > { %p2741_p5 = pnand %p2739_p4, %p2736_p3 }
 0x1f7   : > { %2744 = shalt.err (!%p2741_p5)
}
 0x1f8   : > { %2595 = dma.vmem_to_hbm [thread:$0]  (%p2604_p10), %s3359_s22, 16, %s3464_s8, [#allocation9]  }
 0x1f9   : > { %2758 = dma.done.wait (%p2604_p10), [#allocation4], 16  }
 0x1fa   : > { %2760 = vsyncadd (%p2604_p10), [#allocation4], 4294967280 }
 0x1fb   : > { %2762 = dma.done.wait (%p2604_p10), [#allocation6], 32  }
 0x1fc   : > { %2764 = vsyncadd (%p2604_p10), [#allocation6], 4294967264 }
 0x1fd   : > { %2766 = dma.done.wait (%p2604_p10), [#allocation9], 16  }
 0x1fe   : > { %2768 = vsyncadd (%p2604_p10), [#allocation9], 4294967280 }
 0x1ff PF: > { %p19_p6 = scmp.ge.s32.totalorder %s2850_s9, 4   ;;  %s3465_s27 = smov %s2775_s28 }
 0x200   : > { %s3466_s28 = smov %s2859_s12  ;;  %s3467_s29 = smov %s2850_s9 }
 0x201   :  { %21 = sbr.rel (!%p19_p6) target bundleno = 4 (0x4), region = 165 }
 0x208   :  { %2040 = vsyncpa [#allocation4], 1 }
 0x209   :  { %2042 = vsyncpa [#allocation4 + $0x1], 1 }
 0x20a   :  { %2043 = vsyncpa [#allocation6], 1 }
 0x20b   :  { %2044 = vsyncpa [#allocation9], 1 }

</bundles_post_ra>
